<compile_context>
chip_gen: v6e
topology: v6e:2x2x1
jax: 0.10.0
libtpu: 0.0.40
codegen_flags: <defaults>
</compile_context>

<pallas_src>
import functools
import math

import jax
import jax.numpy as jnp
from jax.experimental import pallas as pl
from jax.experimental.pallas import tpu as pltpu

_PREC = jax.lax.Precision.HIGHEST


def _round_up(x, m):
    return (x + m - 1) // m * m


def _choose_b_tile(n, max_tile=16):
    """Largest tile <= max_tile that (a) yields >= 2 grid steps when possible
    (so megacore / v7x dual-TC gets work) and (b) minimizes batch padding."""
    if n <= 1:
        return 1
    best_key, best_bt = None, 1
    for bt in range(1, max_tile + 1):
        steps = -(-n // bt)
        pad = steps * bt - n
        key = (steps >= 2, -pad, bt)
        if best_key is None or key > best_key:
            best_key, best_bt = key, bt
    return best_bt


def _estimate_vmem_bytes(b_tile, l_pad, c, num_heads, d_pad, compute_dtype):
    """Rough per-step VMEM footprint (double-buffered operands + temporaries)."""
    cs = jnp.dtype(compute_dtype).itemsize
    tokens_blk = b_tile * l_pad * c * cs
    weights = (3 * c * c + c * d_pad) * cs
    small = (3 * c + d_pad) * 4 + num_heads * c * 4
    out_blk = b_tile * d_pad * 4
    temps = (b_tile * l_pad * c * 2 * (4 + cs)
             + b_tile * num_heads * 2 * (l_pad + c) * 4)
    return int(1.25 * (2 * (tokens_blk + out_blk + small + weights) + temps)) + (2 << 20)


def _attn_pool_kernel(x_ref, mask_ref, wq_ref, wk_ref, wv_ref, wc_ref,
                      bq_ref, bk_ref, bv_ref, bc_ref, o_ref,
                      *, seq_len, num_heads, high_precision):
    """One batch tile of CLS-only multi-head attention pooling."""
    b_tile, l_pad, c = x_ref.shape
    d_head = c // num_heads
    cdt = x_ref.dtype
    f32 = jnp.float32
    prec = jax.lax.Precision.HIGHEST if high_precision else jax.lax.Precision.DEFAULT

    mask_hc = mask_ref[...]                                   # (H, C) f32 head selector

    # CLS-only query projection for the whole tile: (b_tile, C), f32 accumulate.
    cls = x_ref[:, 0, :]                                      # (b_tile, C)
    q = jnp.dot(cls, wq_ref[...], preferred_element_type=f32, precision=prec)
    q = (q + bq_ref[...]) * (d_head ** -0.5)                  # scale after bias (MHA semantics)

    # Batched K/V projections: one (b_tile*Lp, C) x (C, C) matmul each.
    # Lp % 8 == 0, so merging the leading dims is layout-free.
    x2d = x_ref[...].reshape(b_tile * l_pad, c)
    k = jnp.dot(x2d, wk_ref[...], preferred_element_type=f32, precision=prec) + bk_ref[...]
    v = jnp.dot(x2d, wv_ref[...], preferred_element_type=f32, precision=prec) + bv_ref[...]
    k3 = k.astype(cdt).reshape(b_tile, l_pad, c)
    v3 = v.astype(cdt).reshape(b_tile, l_pad, c)

    # Per-head query rows via the head-selector mask -> (b_tile, H, C).
    mq = (q[:, None, :] * mask_hc[None]).astype(cdt)

    # scores[b, h, l] = sum_{c in head h} q[b, c] * k[b, l, c]
    s = jnp.einsum('bhc,blc->bhl', mq, k3,
                   preferred_element_type=f32, precision=prec)      # (b, H, Lp) f32
    if l_pad > seq_len:                                             # mask padded key columns
        col = jax.lax.broadcasted_iota(jnp.int32, s.shape, 2)
        s = jnp.where(col < seq_len, s, jnp.float32(-1e30))
    s = s - jnp.max(s, axis=-1, keepdims=True)
    p = jnp.exp(s)
    denom = jnp.sum(p, axis=-1, keepdims=True)
    p = p * pl.reciprocal(denom, approx=not high_precision)         # softmax

    # Per-head context, folded back into channel order with the mask.
    hc = jnp.einsum('bhl,blc->bhc', p.astype(cdt), v3,
                    preferred_element_type=f32, precision=prec)     # (b, H, C) f32
    ctx = jnp.sum(hc * mask_hc[None], axis=1)                       # (b, C) f32

    out = jnp.dot(ctx.astype(cdt), wc_ref[...],
                  preferred_element_type=f32, precision=prec) + bc_ref[...]
    o_ref[0] = out.astype(o_ref.dtype)


def attention_pool_2d(x, params, num_heads, *, compute_dtype=jnp.bfloat16):
    """x: (N, C, H, W) float32 (NCHW).  Returns (N, Dout) float32 (CLS token)."""
    pos, wq, bq, wk, bk, wv, bv, wc, bc = params
    N, C, H, W = x.shape
    L = H * W + 1
    Lp = _round_up(L, 8)                      # aligned seq -> free batched K/V merge
    Dout = wc.shape[0]
    d_pad = _round_up(Dout, 128)              # lane-dense output store
    b_tile = _choose_b_tile(N)
    n_steps = -(-N // b_tile)
    n_pad = n_steps * b_tile
    high_precision = jnp.dtype(compute_dtype) == jnp.dtype(jnp.float32)

    # Token construction stays in plain JAX (single cheap pass).
    tokens = x.reshape(N, C, H * W).transpose(0, 2, 1)              # (N, HW, C)
    tokens = jnp.concatenate([tokens.mean(axis=1, keepdims=True), tokens], axis=1)
    tokens = (tokens + pos[None]).astype(compute_dtype)             # (N, L, C)
    tokens = jnp.pad(tokens, ((0, n_pad - N), (0, Lp - L), (0, 0)))

    # Head-selector mask: built once in the wrapper, DMA'd once, VMEM resident.
    chan_head = jnp.arange(C, dtype=jnp.int32) // (C // num_heads)
    mask_hc = (jnp.arange(num_heads, dtype=jnp.int32)[:, None]
               == chan_head[None, :]).astype(jnp.float32)           # (H, C)

    # Weights pre-transposed to (in, out): kernel does canonical (M,K)x(K,N).
    wq_t = wq.T.astype(compute_dtype)
    wk_t = wk.T.astype(compute_dtype)
    wv_t = wv.T.astype(compute_dtype)
    wc_p = wc if d_pad == Dout else jnp.pad(wc, ((0, d_pad - Dout), (0, 0)))
    bc_p = bc if d_pad == Dout else jnp.pad(bc, ((0, d_pad - Dout),))
    wc_t = wc_p.T.astype(compute_dtype)                             # (C, d_pad)

    est = _estimate_vmem_bytes(b_tile, Lp, C, num_heads, d_pad, compute_dtype)
    vmem_limit = None
    if est > (32 << 20):                     # only override when default is too small
        try:
            phys = pltpu.get_tpu_info().vmem_capacity_bytes
        except Exception:
            phys = 64 << 20
        vmem_limit = min(est, int(phys * 0.9))

    kernel = functools.partial(_attn_pool_kernel, seq_len=L, num_heads=num_heads,
                               high_precision=high_precision)
    const = lambda i: (0, 0)
    out = pl.pallas_call(
        kernel,
        out_shape=jax.ShapeDtypeStruct((n_steps, b_tile, d_pad), jnp.float32),
        grid=(n_steps,),
        in_specs=[
            pl.BlockSpec((b_tile, Lp, C), lambda i: (i, 0, 0)),     # tokens
            pl.BlockSpec((num_heads, C), const),                    # head-selector mask
            pl.BlockSpec((C, C), const),                            # Wq^T (in,out)
            pl.BlockSpec((C, C), const),                            # Wk^T
            pl.BlockSpec((C, C), const),                            # Wv^T
            pl.BlockSpec((C, d_pad), const),                        # Wc^T (padded)
            pl.BlockSpec((1, C), const),                            # bq
            pl.BlockSpec((1, C), const),                            # bk
            pl.BlockSpec((1, C), const),                            # bv
            pl.BlockSpec((1, d_pad), const),                        # bc (padded)
        ],
        out_specs=pl.BlockSpec((1, b_tile, d_pad), lambda i: (i, 0, 0)),
        compiler_params=pltpu.CompilerParams(
            dimension_semantics=("parallel",),
            vmem_limit_bytes=vmem_limit),
    )(tokens, mask_hc, wq_t, wk_t, wv_t, wc_t,
      bq[None].astype(jnp.float32), bk[None].astype(jnp.float32),
      bv[None].astype(jnp.float32), bc_p[None].astype(jnp.float32))

    return out.reshape(n_pad, d_pad)[:N, :Dout]


def attention_pool_2d_ref(x, params, num_heads):
    """Pure-JAX reference mirroring F.multi_head_attention_forward."""
    pos, wq, bq, wk, bk, wv, bv, wc, bc = params
    N, C, H, W = x.shape
    d_head = C // num_heads
    t = x.reshape(N, C, H * W).transpose(0, 2, 1)
    t = jnp.concatenate([t.mean(axis=1, keepdims=True), t], axis=1) + pos[None]
    L = t.shape[1]
    q = (t @ wq.T + bq) * (d_head ** -0.5)
    k = t @ wk.T + bk
    v = t @ wv.T + bv
    qh = q.reshape(N, L, num_heads, d_head).transpose(0, 2, 1, 3)
    kh = k.reshape(N, L, num_heads, d_head).transpose(0, 2, 1, 3)
    vh = v.reshape(N, L, num_heads, d_head).transpose(0, 2, 1, 3)
    s = jnp.einsum('nhqd,nhkd->nhqk', qh, kh, precision=_PREC)
    p = jax.nn.softmax(s, axis=-1)
    o = jnp.einsum('nhqk,nhkd->nhqd', p, vh, precision=_PREC)
    o = o.transpose(0, 2, 1, 3).reshape(N, L, C)
    out = jnp.einsum('nlc,dc->nld', o, wc, precision=_PREC) + bc
    return out[:, 0, :]


def init_params(key, spacial_dim, embed_dim, output_dim):
    """Deterministic synthetic parameters matching the module's __init__ shapes."""
    ks = jax.random.split(key, 9)
    L = spacial_dim ** 2 + 1
    s = 1.0 / math.sqrt(embed_dim)
    pos = jax.random.normal(ks[0], (L, embed_dim), jnp.float32) * s
    wq = jax.random.normal(ks[1], (embed_dim, embed_dim), jnp.float32) * s
    bq = jax.random.normal(ks[2], (embed_dim,), jnp.float32) * 0.02
    wk = jax.random.normal(ks[3], (embed_dim, embed_dim), jnp.float32) * s
    bk = jax.random.normal(ks[4], (embed_dim,), jnp.float32) * 0.02
    wv = jax.random.normal(ks[5], (embed_dim, embed_dim), jnp.float32) * s
    bv = jax.random.normal(ks[6], (embed_dim,), jnp.float32) * 0.02
    wc = jax.random.normal(ks[7], (output_dim, embed_dim), jnp.float32) * s
    bc = jax.random.normal(ks[8], (output_dim,), jnp.float32) * 0.02
    return (pos, wq, bq, wk, bk, wv, bv, wc, bc)


if __name__ == "__main__":
    # Small shapes: spacial_dim=4 (H=W=4), embed_dim=32, num_heads=4, output_dim=16.
    batch, embed_dim, spacial_dim, num_heads, output_dim = 2, 32, 4, 4, 16

    key = jax.random.PRNGKey(0)
    k_x, k_p = jax.random.split(key)
    x = jax.random.normal(k_x, (batch, embed_dim, spacial_dim, spacial_dim),
                          jnp.float32)
    params = init_params(k_p, spacial_dim, embed_dim, output_dim)

    ref = attention_pool_2d_ref(x, params, num_heads)

    # Tight correctness check: f32 + HIGHEST path.
    out_f32 = jax.block_until_ready(
        attention_pool_2d(x, params, num_heads, compute_dtype=jnp.float32))
    assert out_f32.shape == (batch, output_dim), out_f32.shape
    assert jnp.allclose(out_f32, ref, atol=1e-4, rtol=1e-4), \
        float(jnp.max(jnp.abs(out_f32 - ref)))

    # Default fast path: bf16 MXU inputs, f32 accumulation (looser tolerance).
    out_bf16 = jax.block_until_ready(attention_pool_2d(x, params, num_heads))
    assert out_bf16.shape == (batch, output_dim), out_bf16.shape
    assert jnp.allclose(out_bf16, ref, atol=1e-1, rtol=1e-1), \
        float(jnp.max(jnp.abs(out_bf16 - ref)))

    print("KERNEL_OK")
</pallas_src>

<mosaic_0001>
module attributes {stable_mosaic.version = 11 : i64} {
  func.func @_attn_pool_kernel(%arg0: i32, %arg1: memref<1x24x32xf32, #tpu.memory_space<vmem>>, %arg2: memref<4x32xf32, #tpu.memory_space<vmem>>, %arg3: memref<32x32xf32, #tpu.memory_space<vmem>>, %arg4: memref<32x32xf32, #tpu.memory_space<vmem>>, %arg5: memref<32x32xf32, #tpu.memory_space<vmem>>, %arg6: memref<32x128xf32, #tpu.memory_space<vmem>>, %arg7: memref<1x32xf32, #tpu.memory_space<vmem>>, %arg8: memref<1x32xf32, #tpu.memory_space<vmem>>, %arg9: memref<1x32xf32, #tpu.memory_space<vmem>>, %arg10: memref<1x128xf32, #tpu.memory_space<vmem>>, %arg11: memref<1x1x128xf32, #tpu.memory_space<vmem>>) attributes {dimension_semantics = [#tpu.dimension_semantics<parallel>], iteration_bounds = array<i64: 2>, scalar_prefetch = 0 : i64, scratch_operands = 0 : i64, tpu.core_type = #tpu.core_type<tc>, window_params = [{transform_indices = @transform_0, window_bounds = array<i64: 1, 24, 32>}, {pipeline_mode = #tpu.pipeline_mode<synchronous>, transform_indices = @transform_1, window_bounds = array<i64: 4, 32>}, {pipeline_mode = #tpu.pipeline_mode<synchronous>, transform_indices = @transform_2, window_bounds = array<i64: 32, 32>}, {pipeline_mode = #tpu.pipeline_mode<synchronous>, transform_indices = @transform_3, window_bounds = array<i64: 32, 32>}, {pipeline_mode = #tpu.pipeline_mode<synchronous>, transform_indices = @transform_4, window_bounds = array<i64: 32, 32>}, {pipeline_mode = #tpu.pipeline_mode<synchronous>, transform_indices = @transform_5, window_bounds = array<i64: 32, 128>}, {pipeline_mode = #tpu.pipeline_mode<synchronous>, transform_indices = @transform_6, window_bounds = array<i64: 1, 32>}, {pipeline_mode = #tpu.pipeline_mode<synchronous>, transform_indices = @transform_7, window_bounds = array<i64: 1, 32>}, {pipeline_mode = #tpu.pipeline_mode<synchronous>, transform_indices = @transform_8, window_bounds = array<i64: 1, 32>}, {pipeline_mode = #tpu.pipeline_mode<synchronous>, transform_indices = @transform_9, window_bounds = array<i64: 1, 128>}, {transform_indices = @transform_10, window_bounds = array<i64: 1, 1, 128>}]} {
    %c0 = arith.constant 0 : index
    %c0_0 = arith.constant 0 : index
    %0 = vector.load %arg2[%c0, %c0_0] : memref<4x32xf32, #tpu.memory_space<vmem>>, vector<4x32xf32>
    %c0_1 = arith.constant 0 : index
    %c0_2 = arith.constant 0 : index
    %c0_3 = arith.constant 0 : index
    %1 = vector.load %arg1[%c0_1, %c0_2, %c0_3] : memref<1x24x32xf32, #tpu.memory_space<vmem>>, vector<1x1x32xf32>
    %2 = vector.shape_cast %1 : vector<1x1x32xf32> to vector<1x32xf32>
    %c0_4 = arith.constant 0 : index
    %c0_5 = arith.constant 0 : index
    %3 = vector.load %arg3[%c0_4, %c0_5] : memref<32x32xf32, #tpu.memory_space<vmem>>, vector<32x32xf32>
    %cst = arith.constant dense<0.000000e+00> : vector<1x32xf32>
    %4 = tpu.matmul %2, %3, %cst {dimension_numbers = #tpu.dot_dimension_numbers<[1], [0], [0], [1], [0, 0, 1, 1], [], []>, precision = #tpu.contract_precision<fp32>} : vector<1x32xf32>, vector<32x32xf32>, vector<1x32xf32> -> vector<1x32xf32>
    %c0_6 = arith.constant 0 : index
    %c0_7 = arith.constant 0 : index
    %5 = vector.load %arg7[%c0_6, %c0_7] : memref<1x32xf32, #tpu.memory_space<vmem>>, vector<1x32xf32>
    %6 = arith.addf %4, %5 : vector<1x32xf32>
    %cst_8 = arith.constant 0.353553385 : f32
    %7 = vector.broadcast %cst_8 : f32 to vector<1x32xf32>
    %8 = arith.mulf %6, %7 : vector<1x32xf32>
    %c0_9 = arith.constant 0 : index
    %c0_10 = arith.constant 0 : index
    %c0_11 = arith.constant 0 : index
    %9 = vector.load %arg1[%c0_9, %c0_10, %c0_11] : memref<1x24x32xf32, #tpu.memory_space<vmem>>, vector<1x24x32xf32>
    %10 = vector.shape_cast %9 : vector<1x24x32xf32> to vector<24x32xf32>
    %c0_12 = arith.constant 0 : index
    %c0_13 = arith.constant 0 : index
    %11 = vector.load %arg4[%c0_12, %c0_13] : memref<32x32xf32, #tpu.memory_space<vmem>>, vector<32x32xf32>
    %cst_14 = arith.constant dense<0.000000e+00> : vector<24x32xf32>
    %12 = tpu.matmul %10, %11, %cst_14 {dimension_numbers = #tpu.dot_dimension_numbers<[1], [0], [0], [1], [0, 0, 1, 1], [], []>, precision = #tpu.contract_precision<fp32>} : vector<24x32xf32>, vector<32x32xf32>, vector<24x32xf32> -> vector<24x32xf32>
    %c0_15 = arith.constant 0 : index
    %c0_16 = arith.constant 0 : index
    %13 = vector.load %arg8[%c0_15, %c0_16] : memref<1x32xf32, #tpu.memory_space<vmem>>, vector<1x32xf32>
    %14 = vector.broadcast %13 : vector<1x32xf32> to vector<24x32xf32>
    %15 = arith.addf %12, %14 : vector<24x32xf32>
    %c0_17 = arith.constant 0 : index
    %c0_18 = arith.constant 0 : index
    %16 = vector.load %arg5[%c0_17, %c0_18] : memref<32x32xf32, #tpu.memory_space<vmem>>, vector<32x32xf32>
    %cst_19 = arith.constant dense<0.000000e+00> : vector<24x32xf32>
    %17 = tpu.matmul %10, %16, %cst_19 {dimension_numbers = #tpu.dot_dimension_numbers<[1], [0], [0], [1], [0, 0, 1, 1], [], []>, precision = #tpu.contract_precision<fp32>} : vector<24x32xf32>, vector<32x32xf32>, vector<24x32xf32> -> vector<24x32xf32>
    %c0_20 = arith.constant 0 : index
    %c0_21 = arith.constant 0 : index
    %18 = vector.load %arg9[%c0_20, %c0_21] : memref<1x32xf32, #tpu.memory_space<vmem>>, vector<1x32xf32>
    %19 = vector.broadcast %18 : vector<1x32xf32> to vector<24x32xf32>
    %20 = arith.addf %17, %19 : vector<24x32xf32>
    %21 = vector.shape_cast %15 : vector<24x32xf32> to vector<1x24x32xf32>
    %22 = vector.shape_cast %20 : vector<24x32xf32> to vector<1x24x32xf32>
    %23 = vector.shape_cast %8 : vector<1x32xf32> to vector<1x1x32xf32>
    %24 = vector.shape_cast %0 : vector<4x32xf32> to vector<1x4x32xf32>
    %25 = vector.broadcast %23 : vector<1x1x32xf32> to vector<1x4x32xf32>
    %26 = arith.mulf %25, %24 : vector<1x4x32xf32>
    "tpu.trace_start"() <{level = 10 : i32, message = "bhc,blc->bhl"}> : () -> ()
    %cst_22 = arith.constant dense<0.000000e+00> : vector<1x4x24xf32>
    %27 = tpu.matmul %26, %21, %cst_22 {dimension_numbers = #tpu.dot_dimension_numbers<[2], [2], [1], [1], [0, 0, 0, 1, 1, 1], [0], [0]>, precision = #tpu.contract_precision<fp32>} : vector<1x4x32xf32>, vector<1x24x32xf32>, vector<1x4x24xf32> -> vector<1x4x24xf32>
    "tpu.trace_stop"() : () -> ()
    %28 = tpu.iota {dimensions = array<i32: 2>} : vector<1x4x24xi32>
    %c17_i32 = arith.constant 17 : i32
    %29 = vector.broadcast %c17_i32 : i32 to vector<1x4x24xi32>
    %30 = arith.cmpi slt, %28, %29 : vector<1x4x24xi32>
    %cst_23 = arith.constant -1.000000e+30 : f32
    %31 = vector.broadcast %cst_23 : f32 to vector<1x4x24xf32>
    %32 = arith.select %30, %27, %31 : vector<1x4x24xi1>, vector<1x4x24xf32>
    %cst_24 = arith.constant dense<0xFF800000> : vector<1x4xf32>
    %33 = vector.multi_reduction <maximumf>, %32, %cst_24 [2] : vector<1x4x24xf32> to vector<1x4xf32>
    %34 = vector.shape_cast %33 : vector<1x4xf32> to vector<1x4x1xf32>
    %35 = vector.broadcast %34 : vector<1x4x1xf32> to vector<1x4x24xf32>
    %36 = arith.subf %32, %35 : vector<1x4x24xf32>
    %37 = math.exp %36 : vector<1x4x24xf32>
    %cst_25 = arith.constant dense<0.000000e+00> : vector<1x4xf32>
    %38 = vector.multi_reduction <add>, %37, %cst_25 [2] : vector<1x4x24xf32> to vector<1x4xf32>
    %39 = vector.shape_cast %38 : vector<1x4xf32> to vector<1x4x1xf32>
    %40 = tpu.reciprocal %39 : vector<1x4x1xf32> -> vector<1x4x1xf32>
    %41 = vector.broadcast %40 : vector<1x4x1xf32> to vector<1x4x24xf32>
    %42 = arith.mulf %37, %41 : vector<1x4x24xf32>
    "tpu.trace_start"() <{level = 10 : i32, message = "bhl,blc->bhc"}> : () -> ()
    %cst_26 = arith.constant dense<0.000000e+00> : vector<1x4x32xf32>
    %43 = tpu.matmul %42, %22, %cst_26 {dimension_numbers = #tpu.dot_dimension_numbers<[2], [1], [1], [2], [0, 0, 0, 1, 1, 2], [0], [0]>, precision = #tpu.contract_precision<fp32>} : vector<1x4x24xf32>, vector<1x24x32xf32>, vector<1x4x32xf32> -> vector<1x4x32xf32>
    "tpu.trace_stop"() : () -> ()
    %44 = vector.shape_cast %0 : vector<4x32xf32> to vector<1x4x32xf32>
    %45 = arith.mulf %43, %44 : vector<1x4x32xf32>
    %cst_27 = arith.constant dense<0.000000e+00> : vector<1x32xf32>
    %46 = vector.multi_reduction <add>, %45, %cst_27 [1] : vector<1x4x32xf32> to vector<1x32xf32>
    %c0_28 = arith.constant 0 : index
    %c0_29 = arith.constant 0 : index
    %47 = vector.load %arg6[%c0_28, %c0_29] : memref<32x128xf32, #tpu.memory_space<vmem>>, vector<32x128xf32>
    %cst_30 = arith.constant dense<0.000000e+00> : vector<1x128xf32>
    %48 = tpu.matmul %46, %47, %cst_30 {dimension_numbers = #tpu.dot_dimension_numbers<[1], [0], [0], [1], [0, 0, 1, 1], [], []>, precision = #tpu.contract_precision<fp32>} : vector<1x32xf32>, vector<32x128xf32>, vector<1x128xf32> -> vector<1x128xf32>
    %c0_31 = arith.constant 0 : index
    %c0_32 = arith.constant 0 : index
    %49 = vector.load %arg10[%c0_31, %c0_32] : memref<1x128xf32, #tpu.memory_space<vmem>>, vector<1x128xf32>
    %50 = arith.addf %48, %49 : vector<1x128xf32>
    %c0_33 = arith.constant 0 : index
    %c0_34 = arith.constant 0 : index
    %c0_35 = arith.constant 0 : index
    %51 = vector.load %arg11[%c0_33, %c0_34, %c0_35] : memref<1x1x128xf32, #tpu.memory_space<vmem>>, vector<1x1x128xf32>
    %52 = vector.shape_cast %51 : vector<1x1x128xf32> to vector<1x128xf32>
    %53 = vector.shape_cast %50 : vector<1x128xf32> to vector<1x1x128xf32>
    tpu.vector_store %arg11[%c0_33, %c0_34, %c0_35], %53 {strides = array<i32>} : memref<1x1x128xf32, #tpu.memory_space<vmem>>, vector<1x1x128xf32>,
    return
  }
  func.func @transform_0(%arg0: i32) -> (i32, i32, i32) {
    %c0_i32 = arith.constant 0 : i32
    %c0_i32_0 = arith.constant 0 : i32
    %c0_i32_1 = arith.constant 0 : i32
    return %arg0, %c0_i32, %c0_i32_0 : i32, i32, i32
  }
  func.func @transform_1(%arg0: i32) -> (i32, i32) {
    %c0_i32 = arith.constant 0 : i32
    %c0_i32_0 = arith.constant 0 : i32
    %c0_i32_1 = arith.constant 0 : i32
    return %c0_i32, %c0_i32_0 : i32, i32
  }
  func.func @transform_2(%arg0: i32) -> (i32, i32) {
    %c0_i32 = arith.constant 0 : i32
    %c0_i32_0 = arith.constant 0 : i32
    %c0_i32_1 = arith.constant 0 : i32
    return %c0_i32, %c0_i32_0 : i32, i32
  }
  func.func @transform_3(%arg0: i32) -> (i32, i32) {
    %c0_i32 = arith.constant 0 : i32
    %c0_i32_0 = arith.constant 0 : i32
    %c0_i32_1 = arith.constant 0 : i32
    return %c0_i32, %c0_i32_0 : i32, i32
  }
  func.func @transform_4(%arg0: i32) -> (i32, i32) {
    %c0_i32 = arith.constant 0 : i32
    %c0_i32_0 = arith.constant 0 : i32
    %c0_i32_1 = arith.constant 0 : i32
    return %c0_i32, %c0_i32_0 : i32, i32
  }
  func.func @transform_5(%arg0: i32) -> (i32, i32) {
    %c0_i32 = arith.constant 0 : i32
    %c0_i32_0 = arith.constant 0 : i32
    %c0_i32_1 = arith.constant 0 : i32
    return %c0_i32, %c0_i32_0 : i32, i32
  }
  func.func @transform_6(%arg0: i32) -> (i32, i32) {
    %c0_i32 = arith.constant 0 : i32
    %c0_i32_0 = arith.constant 0 : i32
    %c0_i32_1 = arith.constant 0 : i32
    return %c0_i32, %c0_i32_0 : i32, i32
  }
  func.func @transform_7(%arg0: i32) -> (i32, i32) {
    %c0_i32 = arith.constant 0 : i32
    %c0_i32_0 = arith.constant 0 : i32
    %c0_i32_1 = arith.constant 0 : i32
    return %c0_i32, %c0_i32_0 : i32, i32
  }
  func.func @transform_8(%arg0: i32) -> (i32, i32) {
    %c0_i32 = arith.constant 0 : i32
    %c0_i32_0 = arith.constant 0 : i32
    %c0_i32_1 = arith.constant 0 : i32
    return %c0_i32, %c0_i32_0 : i32, i32
  }
  func.func @transform_9(%arg0: i32) -> (i32, i32) {
    %c0_i32 = arith.constant 0 : i32
    %c0_i32_0 = arith.constant 0 : i32
    %c0_i32_1 = arith.constant 0 : i32
    return %c0_i32, %c0_i32_0 : i32, i32
  }
  func.func @transform_10(%arg0: i32) -> (i32, i32, i32) {
    %c0_i32 = arith.constant 0 : i32
    %c0_i32_0 = arith.constant 0 : i32
    %c0_i32_1 = arith.constant 0 : i32
    return %arg0, %c0_i32, %c0_i32_0 : i32, i32, i32
  }
}

</mosaic_0001>

<bundles_post_ra>
// kernel: tpu_custom_call.1
= control target key start
LH: loop header
LB: loop body
LE: loop exit
PB: predicated region body
PF: predicated region fallthrough
CT: control target
= control target key end

     0   :  { %s5706_s0 = inlined_call_operand.hbm [shape: f32[2,24,32], index: 0, kind: input, shape index: {}]   ;;  %s5707_s1 = inlined_call_operand.hbm [shape: f32[4,32], index: 1, kind: input, shape index: {}]   ;;  %s5708_s2 = inlined_call_operand.hbm [shape: f32[32,32], index: 2, kind: input, shape index: {}]   ;;  %s5709_s3 = inlined_call_operand.hbm [shape: f32[32,32], index: 3, kind: input, shape index: {}]   ;;  %s5710_s4 = inlined_call_operand.hbm [shape: f32[32,32], index: 4, kind: input, shape index: {}]   ;;  %s5711_s5 = inlined_call_operand.hbm [shape: f32[32,128], index: 5, kind: input, shape index: {}]   ;;  %s5712_s6 = inlined_call_operand.vmem [shape: f32[1,32], index: 6, kind: input, shape index: {}]   ;;  %s5713_s7 = inlined_call_operand.vmem [shape: f32[1,32], index: 7, kind: input, shape index: {}]   ;;  %s5714_s8 = inlined_call_operand.vmem [shape: f32[1,32], index: 8, kind: input, shape index: {}]   ;;  %s5715_s9 = inlined_call_operand.vmem [shape: f32[1,128], index: 9, kind: input, shape index: {}]   ;;  %s5716_s10 = inlined_call_operand.hbm [shape: f32[2,1,128], index: 10, kind: output, shape index: {}]  }
   0x1   :  { %5723 = sst [smem:[#allocation19_spill]] %s5707_s1 }
   0x2   :  { %5724 = sst [smem:[#allocation20_spill]] %s5708_s2 }
   0x3   :  { %5725 = sst [smem:[#allocation21_spill]] %s5709_s3 }
   0x4   :  { %5726 = sst [smem:[#allocation22_spill]] %s5710_s4 }
   0x5   :  { %15 = vsyncpa [#allocation3], 0 }
   0x6   :  { %17 = vsyncpa [#allocation3 + $0x1], 0 }
   0x7   :  { %18 = vsyncpa [#allocation6], 0 }
   0x8   :  { %19 = vsyncpa [#allocation9], 0 }
   0x9   :  { %20 = vsyncpa [#allocation12], 0 }
   0xa   :  { %21 = vsyncpa [#allocation4], 0 }
   0xb   :  { %23 = vsyncpa [#allocation4 + $0x1], 0  ;;  %s4798_s13 = smov 0   ;;  %s4800_s14 = smov 0  }
   0xc   :  { %s4802_s15 = smov 0   ;;  %s4804_s16 = smov 0  }
   0xd LB: > { %s4732_s17 = smov [#allocation5]   ;;  %s4819_s19 = sadd.s32 4294967295, %s4730_s16   ;;  %s4730_s16 = sphi %s4804_s16, %s5754_s16   ;;  %s4726_s15 = sphi %s4802_s15, %s5753_s15   ;;  %s4722_s14 = sphi %s4800_s14, %s5752_s14   ;;  %s4718_s13 = sphi %s4798_s13, %s5751_s13  }
   0xe   : > { %s288_s18 = sshll.u32 %s4732_s17, 4  ;;  %p3733_p0 = scmp.ge.s32.totalorder %s4730_s16, 1  ;;  %s289_s18 = int_to_ptr.vmem [resolvable:$true] %s288_s18 }
   0xf   : > { %p5719_p1 = scmp.eq.s32.totalorder %s4819_s19, 0  ;;  %p275_p2 = scmp.lt.s32.totalorder %s4730_s16, 3 }
  0x10   : > { %s4733_s21 = smov [#allocation8]   ;;  %s4734_s24 = smov [#allocation7]  }
  0x11   : > { %p4824_p3 = pnand %p3733_p0, %p275_p2  ;;  %s311_s22 = sshll.u32 %s4733_s21, 4  ;;  %s4837_s22 = int_to_ptr.vmem [resolvable:$true] %s311_s22 }
  0x12   : > { %s298_s25 = sshll.u32 %s4734_s24, 4  ;;  %s4507_s27 = scalar_lea.vmem %s289_s18, 64  ;;  %s4839_s25 = int_to_ptr.vmem [resolvable:$true] %s298_s25 }
  0x13   : > { %s5727_s20 = scalar_select %p4824_p3, 1, 0 }
  0x14   : > { %p4415_p5 = pneg %p4824_p3  ;;  %p4508_p8 = scmp.ne.s32.totalorder %s289_s18, %s4507_s27 }
  0x15   : > { %p4515_p11 = scmp.lt.s32.totalorder %s289_s18, %s289_s18  ;;  %p4516_p12 = scmp.lt.s32.totalorder %s4507_s27, %s4507_s27 }
  0x16   : > { %p4833_p6 = pnand %p4415_p5, %p5719_p1 }
  0x17   : > { %p4517_p13 = por %p4516_p12, %p4515_p11 }
  0x18   : > { %p4843_p7 = pneg %p4833_p6 }
  0x1a   : > { %p4510_p9 = pnand %p4508_p8, %p4843_p7 }
  0x1c   : > { %p4511_p10 = pneg %p4510_p9 }
  0x1e   : > { %p4518_p0 = pnand %p4517_p13, %p4511_p10 }
  0x20   : > { %4521 = shalt.err (!%p4518_p0)
}
  0x21   : > { %s5730_s1 = sld [smem:[#allocation19_spill]]  ;;  %s4533_s30 = scalar_lea.vmem %s4837_s22, 512 }
  0x22   : > { %p4534_p2 = scmp.ne.s32.totalorder %s4837_s22, %s4533_s30  ;;  %p4541_p9 = scmp.lt.s32.totalorder %s4837_s22, %s4837_s22 }
  0x23   : > { %p4542_p11 = scmp.lt.s32.totalorder %s4533_s30, %s4533_s30 }
  0x24   : > { %p4536_p5 = pnand %p4534_p2, %p4843_p7 }
  0x25   : > { %p4543_p10 = por %p4542_p11, %p4541_p9 }
  0x26   : > { %p4537_p8 = pneg %p4536_p5 }
  0x27   : > { %4418 = dma.hbm_to_vmem [thread:$0]  (!%p4833_p6), %s5730_s1, 64, %s289_s18, [#allocation6]  }
  0x28   : > { %p4544_p12 = pnand %p4543_p10, %p4537_p8 }
  0x2a   : > { %4547 = shalt.err (!%p4544_p12)
}
  0x2b   : > { %s5717_s11 = smov 128   ;;  %s5718_s12 = smov 8  }
  0x2c   : > { %s5731_s3 = sld [smem:[#allocation21_spill]]  ;;  %s4559_s21 = scalar_lea.vmem %s4839_s25, 512 }
  0x2d   : > { %p4560_p13 = scmp.ne.s32.totalorder %s4839_s25, %s4559_s21  ;;  %p4567_p5 = scmp.lt.s32.totalorder %s4839_s25, %s4839_s25 }
  0x2e   : > { %p4568_p8 = scmp.lt.s32.totalorder %s4559_s21, %s4559_s21 }
  0x2f   : > { %p4562_p0 = pnand %p4560_p13, %p4843_p7 }
  0x30   : > { %p4569_p9 = por %p4568_p8, %p4567_p5 }
  0x31   : > { %p4563_p2 = pneg %p4562_p0 }
  0x32   : > { %4424 = dma.hbm_to_vmem [thread:$0]  (!%p4833_p6), %s5731_s3, 512, %s4837_s22, [#allocation9], %s5717_s11, %s5717_s11, %s5718_s12  }
  0x33   : > { %p4570_p11 = pnand %p4569_p9, %p4563_p2 }
  0x35   : > { %4573 = shalt.err (!%p4570_p11)
}
  0x36   : > { %s5732_s2 = sld [smem:[#allocation20_spill]]  ;;  %s4737_s22 = smov [#allocation10]  }
  0x37   : > { %s324_s28 = sshll.u32 %s4737_s22, 4  ;;  %s4738_s29 = smov [#allocation11]   ;;  %s325_s28 = int_to_ptr.vmem [resolvable:$true] %s324_s28 }
  0x38   : > { %s337_s30 = sshll.u32 %s4738_s29, 4  ;;  %s4585_s17 = scalar_lea.vmem %s325_s28, 512  ;;  %s338_s30 = int_to_ptr.vmem [resolvable:$true] %s337_s30 }
  0x39   : > { %p4586_p10 = scmp.ne.s32.totalorder %s325_s28, %s4585_s17  ;;  %p4593_p0 = scmp.lt.s32.totalorder %s325_s28, %s325_s28 }
  0x3a   : > { %p4594_p2 = scmp.lt.s32.totalorder %s4585_s17, %s4585_s17 }
  0x3b   : > { %p4588_p12 = pnand %p4586_p10, %p4843_p7 }
  0x3c   : > { %4421 = dma.hbm_to_vmem [thread:$0]  (!%p4833_p6), %s5732_s2, 512, %s4839_s25, [#allocation6], %s5717_s11, %s5717_s11, %s5718_s12  }
  0x3d   : > { %p4589_p13 = pneg %p4588_p12  ;;  %p4595_p5 = por %p4594_p2, %p4593_p0 }
  0x3f   : > { %p4596_p8 = pnand %p4595_p5, %p4589_p13 }
  0x41   : > { %4599 = shalt.err (!%p4596_p8)
}
  0x42   : > { %s5733_s4 = sld [smem:[#allocation22_spill]]  ;;  %s4611_s21 = scalar_lea.vmem %s338_s30, 512 }
  0x43   : > { %p4612_p9 = scmp.ne.s32.totalorder %s338_s30, %s4611_s21  ;;  %p4619_p12 = scmp.lt.s32.totalorder %s338_s30, %s338_s30 }
  0x44   : > { %p4620_p0 = scmp.lt.s32.totalorder %s4611_s21, %s4611_s21 }
  0x45   : > { %p4614_p11 = pnand %p4612_p9, %p4843_p7 }
  0x46   : > { %p4621_p13 = por %p4620_p0, %p4619_p12 }
  0x47   : > { %p4615_p10 = pneg %p4614_p11 }
  0x48   : > { %4427 = dma.hbm_to_vmem [thread:$0]  (!%p4833_p6), %s5733_s4, 512, %s325_s28, [#allocation9], %s5717_s11, %s5717_s11, %s5718_s12  }
  0x49   : > { %p4622_p2 = pnand %p4621_p13, %p4615_p10 }
  0x4b   : > { %4625 = shalt.err (!%p4622_p2)
}
  0x4c   : > { %4430 = dma.hbm_to_vmem [thread:$0]  (!%p4833_p6), %s5711_s5, 512, %s338_s30, [#allocation12], %s5717_s11, %s5717_s11, %s5718_s12  }
  0x4d   : > { %s3732_s23 = sadd.s32 4294967294, %s4730_s16   ;;  %s4906_s26 = sadd.s32 1, %s4730_s16  }
  0x4e   : > { %s36_s22 = sadd.s32 1, %s4726_s15  ;;  %s33_s28 = ssub.s32 %s4730_s16, %s4906_s26 }
  0x4f   : > { %p43_p7 = scmp.ne.s32.totalorder %s4726_s15, %s4722_s14  ;;  %p34_p5 = scmp.eq.s32.totalorder %s33_s28, 0 }
  0x50   : > { %p44_p8 = scmp.eq.s32.totalorder %s4730_s16, 0  ;;  %p49_p9 = scmp.ne.s32.totalorder %s4722_s14, %s4718_s13 }
  0x51   : > { %p262_p11 = scmp.eq.s32.totalorder %s4819_s19, 1  ;;  %p268_p0 = scmp.eq.s32.totalorder %s3732_s23, 1 }
  0x52   : > { %s4918_s29 = scalar_select %p34_p5, %s4726_s15, %s36_s22  }
  0x53   : > { %p45_p10 = por %p44_p8, %p43_p7  ;;  %p4922_p12 = por %p5719_p1, %p49_p9 }
  0x54   : > { %p4926_p6 = por %p262_p11, %p43_p7  ;;  %p4444_p13 = scmp.lt.s32.totalorder %s4730_s16, 2 }
  0x55   : > { %s5734_s17 = scalar_select %p4922_p12, 1, 0 }
  0x56   : > { %s5735_s30 = scalar_select %p4926_p6, 1, 0 }
  0x57   : > { %s363_s25 = sand.u32 1, %s4726_s15   ;;  %p4932_p2 = por %p268_p0, %p49_p9 }
  0x58   : > { %s4388_s21 = smul.u32 24, %s363_s25  ;;  %p4936_p5 = pnand %p4444_p13, %p45_p10 }
  0x59   : > { %s5736_s18 = scalar_select %p4932_p2, 1, 0 }
  0x5a   : > { %s4389_s27 = smul.u32 384, %s4730_s16  ;;  %s367_s23 = scalar_lea.vmem [#allocation2], %s4388_s21 }
  0x5b   : > { %s374_s12 = sshll.u32 %s367_s23, 4  ;;  %s4948_s1 = scalar_lea.sflag [#allocation3], %s363_s25  ;;  %s4946_s12 = int_to_ptr.vmem [resolvable:$true] %s374_s12 }
  0x5c   : > { %s4944_s11 = scalar_lea.hbm %s5706_s0, %s4389_s27  ;;  %p4628_p8 = pneg %p4936_p5 }
  0x5d   : > { %s4626_s2 = scalar_lea.hbm %s4944_s11, 384  ;;  %s4631_s27 = scalar_lea.hbm %s5706_s0, 768 }
  0x5e   : > { %p4627_p7 = scmp.ne.s32.totalorder %s4944_s11, %s4626_s2  ;;  %p4632_p10 = scmp.lt.s32.totalorder %s4944_s11, %s5706_s0 }
  0x5f   : > { %p4633_p0 = scmp.lt.s32.totalorder %s4631_s27, %s4626_s2 }
  0x60   : > { %p4629_p9 = pnand %p4628_p8, %p4627_p7 }
  0x61   : > { %p4634_p13 = por %p4633_p0, %p4632_p10 }
  0x62   : > { %p4630_p11 = pneg %p4629_p9 }
  0x64   : > { %p4635_p4 = pnand %p4634_p13, %p4630_p11 }
  0x66   : > { %4638 = shalt.err (!%p4635_p4)
}
  0x67   : > { %s4639_s25 = scalar_lea.vmem %s4946_s12, 384  ;;  %s4739_s21 = smov [#allocation2]  }
  0x68   : > { %p4640_p1 = scmp.ne.s32.totalorder %s4946_s12, %s4639_s25  ;;  %s4644_s23 = sshll.u32 %s4739_s21, 4  ;;  %s4645_s23 = int_to_ptr.vmem [resolvable:$false] %s4644_s23 }
  0x69   : > { %s4646_s3 = scalar_lea.vmem %s4645_s23, 768  ;;  %p4647_p9 = scmp.lt.s32.totalorder %s4946_s12, %s4645_s23 }
  0x6a   : > { %p4642_p2 = pnand %p4640_p1, %p4628_p8  ;;  %p4648_p6 = scmp.lt.s32.totalorder %s4646_s3, %s4639_s25 }
  0x6c   : > { %p4643_p7 = pneg %p4642_p2  ;;  %p4649_p12 = por %p4648_p6, %p4647_p9 }
  0x6e   : > { %p4650_p3 = pnand %p4649_p12, %p4643_p7 }
  0x70   : > { %4653 = shalt.err (!%p4650_p3)
}
  0x71   : > { %s5738_s2 = smov 8   ;;  %s5739_s4 = smov 128  }
  0x72   : > { %4434 = dma.hbm_to_vmem [thread:$0]  (!%p4936_p5), %s4944_s11, 384, %s4946_s12, %s4948_s1, %s5739_s4, %s5739_s4, %s5738_s2  }
  0x73   : > { %p5740_p1 = scmp.ne.s32.totalorder %s5727_s20, 0 }
  0x74   : > { %s4975_s27 = sand.u32 (!%p5740_p1), 1, %s4722_s14   ;;  %p5741_p3 = scmp.ne.s32.totalorder (!%p5740_p1), %s5734_s17, 0 }
  0x75   : > { %386 = sbr.rel (%p5740_p1) target bundleno = 1440 (0x5a0), region = 60  ;;  %s389_s28 = scalar_lea.sflag (!%p5740_p1), [#allocation3], %s4975_s27 }
  0x76   : > { %s4390_s22 = smul.u32 (!%p5740_p1), 24, %s4975_s27 }
  0x78   : > { %s4979_s25 = scalar_lea.vmem (!%p5740_p1), [#allocation2], %s4390_s22 }
  0x7a   : > { %4697 = dma.done.wait (%p5741_p3), %s389_s28, 384  }
  0x7b   : > { %4699 = vsyncadd (%p5741_p3), %s389_s28, 4294966912  ;;  %p5742_p4 = scmp.eq.s32.totalorder %s4819_s19, 0 }
  0x7d   : > { %4701 = dma.done.wait (%p5742_p4), [#allocation6], 576   ;;  %p5743_p12 = pmov %p5742_p4 }
  0x7e   : > { %p5744_p6 = pmov %p5742_p4 }
  0x7f   : > { %4703 = vsyncadd (%p5743_p12), [#allocation6], 4294966720 }
  0x80   : > { %4705 = dma.done.wait (%p5744_p6), [#allocation9], 1024   ;;  %p5745_p2 = pmov %p5742_p4 }
  0x82   : > { %4707 = vsyncadd (%p5745_p2), [#allocation9], 4294966272  ;;  %p5746_p5 = pmov %p5745_p2 }
  0x83   : > { %p5747_p8 = pmov %p5745_p2 }
  0x84   : > { %4709 = dma.done.wait (%p5746_p5), [#allocation12], 512  }
  0x85   : > { %4711 = vsyncadd (%p5747_p8), [#allocation12], 4294966784  ;;  %v4740_v0 = vmov 0.0   ;;  %vm4741_vm0 = vmmov 0   ;;  %vm455_vm1 = vcmask 261120   ;;  %v453_v1 = vld [vmem:[#allocation7 + $0x18] sm:$0xff] }
  0x86   : > { %3944 = vmatprep.subr.mxu0 %v4740_v0  ;;  %3955 = vmatprep.subr.mxu1 %v4740_v0  ;;  %v452_v2 = vld [vmem:[#allocation7 + $0x10] sm:$0xff]  ;;  %v451_v3 = vld [vmem:[#allocation7 + $0x8] sm:$0xff]  ;;  %v5003_v4 = vand.u32 4294901760, %v453_v1  ;;  %v450_v7 = vld [vmem:[#allocation7] sm:$0xff]  ;;  %vm2614_vm3 = vcmask 191488   ;;  %vm2626_vm4 = vcmask 195584  }
  0x87   : > { %3952 = vmatprep.mubr.msk.f32.mxu0 %vm4741_vm0, %v4740_v0  ;;  %3963 = vmatprep.mubr.msk.f32.mxu1 %vm4741_vm0, %v4740_v0  ;;  %v5005_v5 = vand.u32 4294901760, %v452_v2  ;;  %v5007_v6 = vand.u32 4294901760, %v451_v3  ;;  %v449_v8 = vld [vmem:[%s4979_s25] sm:$0x1]  ;;  %v5010_v9 = vand.u32 4294901760, %v450_v7  ;;  %v951_v33 = vld [vmem:[#allocation8 + $0x18] sm:$0xff] }
  0x88   : > { %v457_v10 = vsel %vm455_vm1, %v449_v8, 0  ;;  %3945 = vmatpush3.msra.mxu0 %v5003_v4  ;;  %v564_v11 = vsub.f32 %v453_v1, %v5003_v4  ;;  %v945_v32 = vld [vmem:[%s4979_s25] sm:$0xff]  ;;  %v946_v35 = vld [vmem:[%s4979_s25 + $0x8] sm:$0xff]  ;;  %v5068_v37 = vand.u32 4294901760, %v951_v33  ;;  %v947_v43 = vld [vmem:[%s4979_s25 + $0x10] sm:$0xff]  ;;  %vm3103_vm5 = vcmask 257024  }
  0x89   : > { %v5015_v12 = vand.u32 4294901760, %v457_v10  ;;  %v5018_v13 = vsub.f32 %v452_v2, %v5005_v5  ;;  %v5021_v14 = vsub.f32 %v451_v3, %v5007_v6  ;;  %3946 = vmatprep.subr.mxu0 %v4740_v0  ;;  %v5025_v15 = vsub.f32 %v450_v7, %v5010_v9  ;;  %v950_v36 = vld [vmem:[#allocation8 + $0x10] sm:$0xff]  ;;  %v949_v39 = vld [vmem:[#allocation8 + $0x8] sm:$0xff]  ;;  %v948_v42 = vld [vmem:[#allocation8] sm:$0xff]  ;;  %s3749_s3 = sshll.u32 %s4819_s19, 4  ;;  %s447_s2 = scalar_lea.vmem [#allocation13], %s4975_s27 }
  0x8a   : > { %3947 = vmatpush3.msra.mxu0 %v5005_v5  ;;  %v565_v16 = vand.u32 4294901760, %v564_v11  ;;  %v960_v34 = vsel %vm455_vm1, %v945_v32, 0  ;;  %v963_v40 = vsel %vm455_vm1, %v946_v35, 0  ;;  %v5076_v41 = vand.u32 4294901760, %v950_v36  ;;  %s3618_s4 = sshll.u32 %s447_s2, 4  ;;  %s3616_s25 = scalar_lea.hbm %s5716_s10, %s3749_s3  ;;  %s3619_s4 = int_to_ptr.vmem [resolvable:$true] %s3618_s4 }
  0x8b   : > { %v5029_v17 = vsub.f32 %v457_v10, %v5015_v12  ;;  %v572_v18 = vand.u32 4294901760, %v5018_v13  ;;  %v579_v19 = vand.u32 4294901760, %v5021_v14  ;;  %3948 = vmatprep.subr.mxu0 %v4740_v0  ;;  %v586_v20 = vand.u32 4294901760, %v5025_v15  ;;  %s3606_s1 = scalar_lea.sflag [#allocation4], %s4975_s27  ;;  %s4654_s20 = scalar_lea.vmem %s3619_s4, 16 }
  0x8c   : > { %3949 = vmatpush3.msra.mxu0 %v5007_v6  ;;  %v566_v21 = vsub.f32 %v564_v11, %v565_v16  ;;  %v5070_v38 = vand.u32 4294901760, %v960_v34  ;;  %v5083_v44 = vsub.f32 %v951_v33, %v5068_v37  ;;  %v5085_v45 = vand.u32 4294901760, %v949_v39  ;;  %p4655_p11 = scmp.ne.s32.totalorder %s3619_s4, %s4654_s20  ;;  %p5748_p10 = scmp.ne.s32.totalorder %s5735_s30, 0 }
  0x8d   : > { %v530_v22 = vand.u32 4294901760, %v5029_v17  ;;  %v573_v23 = vsub.f32 %v5018_v13, %v572_v18  ;;  %v580_v24 = vsub.f32 %v5021_v14, %v579_v19  ;;  %3950 = vmatprep.subr.mxu0 %v4740_v0  ;;  %v587_v28 = vsub.f32 %v5025_v15, %v586_v20  ;;  %s4742_s11 = smov [#allocation13]  }
  0x8e   : > { %3951 = vmatpush3.msra.mxu0 %v5010_v9  ;;  %v567_v25 = vand.u32 4294901760, %v566_v21  ;;  %v5088_v46 = vsub.f32 %v960_v34, %v5070_v38  ;;  %v5090_v47 = vand.u32 4294901760, %v963_v40  ;;  %v5098_v48 = vsub.f32 %v950_v36, %v5076_v41  ;;  %p4656_p0 = pnand %p4655_p11, %p5748_p10  ;;  %s4658_s12 = sshll.u32 %s4742_s11, 4  ;;  %s4659_s12 = int_to_ptr.vmem [resolvable:$false] %s4658_s12 }
  0x8f   : > { %v531_v26 = vsub.f32 %v5029_v17, %v530_v22  ;;  %v574_v27 = vand.u32 4294901760, %v573_v23  ;;  %3966 = vmatprep.subr.mxu0 %v4740_v0  ;;  %v581_v30 = vand.u32 4294901760, %v580_v24  ;;  %v588_v31 = vand.u32 4294901760, %v587_v28  ;;  %v1539_v23 = vld [vmem:[#allocation10] sm:$0xff]  ;;  %s4660_s19 = scalar_lea.vmem %s4659_s12, 32  ;;  %p4661_p7 = scmp.lt.s32.totalorder %s3619_s4, %s4659_s12 }
  0x90   : > { %3956 = vmatpush3.msra.mxu1 %v567_v25  ;;  %v5100_v49 = vand.u32 4294901760, %v948_v42  ;;  %v966_v50 = vsel %vm455_vm1, %v947_v43, 0  ;;  %v5111_v51 = vsub.f32 %v949_v39, %v5085_v45  ;;  %v5114_v52 = vand.u32 4294901760, %v5088_v46  ;;  %p4657_p13 = pneg %p4656_p0  ;;  %p4662_p9 = scmp.lt.s32.totalorder %s4660_s19, %s4654_s20 }
  0x91   : > { %v532_v29 = vand.u32 4294901760, %v531_v26  ;;  %3957 = vmatprep.subr.mxu1 %v4740_v0  ;;  %v1094_v53 = vand.u32 4294901760, %v5083_v44  ;;  %v5118_v54 = vsub.f32 %v963_v40, %v5090_v47  ;;  %v5123_v55 = vand.u32 4294901760, %v966_v50 }
  0x92   : > { %3958 = vmatpush3.msra.mxu1 %v574_v27  ;;  %v5128_v56 = vsub.f32 %v948_v42, %v5100_v49  ;;  %v1101_v57 = vand.u32 4294901760, %v5098_v48  ;;  %v1040_v58 = vsub.f32 %v5088_v46, %v5114_v52  ;;  %v1108_v61 = vand.u32 4294901760, %v5111_v51  ;;  %p4663_p1 = por %p4662_p9, %p4661_p7 }
  0x93   : > { %3953 = vmatmul.mubr.f32.vlgmr.msra.gmra.mxu0 %v532_v29  ;;  %3959 = vmatprep.subr.mxu1 %v4740_v0  ;;  %v1095_v59 = vsub.f32 %v5083_v44, %v1094_v53  ;;  %v5141_v60 = vand.u32 4294901760, %v5118_v54  ;;  %v5147_v62 = vsub.f32 %v966_v50, %v5123_v55  ;;  %v5306_v27 = vand.u32 4294901760, %v1539_v23 }
  0x94   : > { %3967 = vmatpush3.msra.mxu0 %v564_v11  ;;  %3960 = vmatpush3.msra.mxu1 %v581_v30  ;;  %v1102_v63 = vsub.f32 %v5098_v48, %v1101_v57  ;;  %v1115_v1 = vand.u32 4294901760, %v5128_v56  ;;  %v5159_v2 = vand.u32 4294901760, %v1040_v58  ;;  %p4664_p3 = pnand %p4663_p1, %p4657_p13 }
  0x95   : > { %3968 = vmatprep.subr.mxu0 %v4740_v0  ;;  %3961 = vmatprep.subr.mxu1 %v4740_v0  ;;  %v1096_v3 = vand.u32 4294901760, %v1095_v59  ;;  %v5312_v30 = vsub.f32 %v1539_v23, %v5306_v27 }
  0x96   : > { %3969 = vmatpush3.msra.mxu0 %v5018_v13  ;;  %3962 = vmatpush3.msra.mxu1 %v588_v31  ;;  %v1103_v7 = vand.u32 4294901760, %v1102_v63  ;;  %v1116_v8 = vsub.f32 %v5128_v56, %v1115_v1 }
  0x97   : > { %3970 = vmatprep.subr.mxu0 %v4740_v0  ;;  %3964 = vmatmul.mubr.f32.vlgmr.msra.gmra.mxu1 %v5015_v12  ;;  %v1697_v34 = vand.u32 4294901760, %v5312_v30 }
  0x98   : > { %3971 = vmatpush3.msra.mxu0 %v5021_v14  ;;  %3977 = vmatprep.subr.mxu1 %v4740_v0  ;;  %v1542_v14 = vld [vmem:[#allocation10 + $0x18] sm:$0xff] }
  0x99   : > { %3972 = vmatprep.subr.mxu0 %v4740_v0  ;;  %3974 = vmatprep.mubr.msk.f32.mxu0 %vm4741_vm0, %v4740_v0  ;;  %v1698_v36 = vsub.f32 %v5312_v30, %v1697_v34 }
  0x9a   : > { %3973 = vmatpush3.msra.mxu0 %v5025_v15  ;;  %3978 = vmatpush3.msra.mxu1 %v5003_v4  ;;  %v5283_v15 = vand.u32 4294901760, %v1542_v14 }
  0x9b   : > { %3988 = vmatprep.subr.mxu0 %v4740_v0  ;;  %3975 = vmatmul.mubr.f32.vlgmr.msra.gmra.mxu0 %v5029_v17  ;;  %v1541_v17 = vld [vmem:[#allocation10 + $0x10] sm:$0xff] }
  0x9c   : > { %3979 = vmatprep.subr.mxu1 %v4740_v0  ;;  %3989 = vmatpush3.msra.mxu0 %v565_v16  ;;  %v5287_v16 = vsub.f32 %v1542_v14, %v5283_v15 }
  0x9d   : > { %3980 = vmatpush3.msra.mxu1 %v5005_v5  ;;  %3990 = vmatprep.subr.mxu0 %v4740_v0 }
  0x9e   : > { %3981 = vmatprep.subr.mxu1 %v4740_v0  ;;  %3991 = vmatpush3.msra.mxu0 %v572_v18  ;;  %v5290_v18 = vand.u32 4294901760, %v1541_v17  ;;  %v1676_v21 = vand.u32 4294901760, %v5287_v16 }
  0x9f   : > { %3982 = vmatpush3.msra.mxu1 %v5007_v6  ;;  %3992 = vmatprep.subr.mxu0 %v4740_v0 }
  0xa0   : > { %3983 = vmatprep.subr.mxu1 %v4740_v0  ;;  %3993 = vmatpush3.msra.mxu0 %v579_v19  ;;  %v1540_v19 = vld [vmem:[#allocation10 + $0x8] sm:$0xff]  ;;  %v1677_v24 = vsub.f32 %v5287_v16, %v1676_v21 }
  0xa1   : > { %3984 = vmatpush3.msra.mxu1 %v5010_v9  ;;  %3985 = vmatprep.mubr.msk.f32.mxu1 %vm4741_vm0, %v4740_v0 }
  0xa2   : > { %3994 = vmatprep.subr.mxu0 %v4740_v0  ;;  %3986 = vmatmul.mubr.f32.vlgmr.msra.gmra.mxu1 %v530_v22  ;;  %v5297_v22 = vand.u32 4294901760, %v1540_v19  ;;  %v1678_v28 = vand.u32 4294901760, %v1677_v24 }
  0xa3   : > { %3995 = vmatpush3.msra.mxu0 %v586_v20  ;;  %3999 = vmatprep.subr.mxu1 %v4740_v0  ;;  %v5294_v20 = vsub.f32 %v1541_v17, %v5290_v18 }
  0xa4   : > { %3996 = vmatprep.mubr.msk.f32.mxu0 %vm4741_vm0, %v4740_v0  ;;  %4000 = vmatpush3.msra.mxu1 %v5003_v4  ;;  %v1050_v4 = vsub.f32 %v5118_v54, %v5141_v60  ;;  %v5303_v25 = vsub.f32 %v1540_v19, %v5297_v22 }
  0xa5   : > { %4010 = vmatprep.subr.mxu0 %v4740_v0  ;;  %3997 = vmatmul.mubr.f32.vlgmr.msra.gmra.mxu0 %v5015_v12  ;;  %v1683_v26 = vand.u32 4294901760, %v5294_v20 }
  0xa6   : > { %4001 = vmatprep.subr.mxu1 %v4740_v0  ;;  %4011 = vmatpush3.msra.mxu0 %v5068_v37  ;;  %v1690_v31 = vand.u32 4294901760, %v5303_v25 }
  0xa7   : > { %4002 = vmatpush3.msra.mxu1 %v5005_v5  ;;  %4012 = vmatprep.subr.mxu0 %v4740_v0  ;;  %v1109_v5 = vsub.f32 %v5111_v51, %v1108_v61  ;;  %v1684_v29 = vsub.f32 %v5294_v20, %v1683_v26 }
  0xa8   : > { %4003 = vmatprep.subr.mxu1 %v4740_v0  ;;  %4013 = vmatpush3.msra.mxu0 %v5076_v41  ;;  %v1691_v33 = vsub.f32 %v5303_v25, %v1690_v31 }
  0xa9   : > { %4004 = vmatpush3.msra.mxu1 %v5007_v6  ;;  %4014 = vmatprep.subr.mxu0 %v4740_v0  ;;  %v5170_v6 = vand.u32 4294901760, %v5147_v62  ;;  %v1110_v10 = vand.u32 4294901760, %v1109_v5  ;;  %v1685_v32 = vand.u32 4294901760, %v1684_v29 }
  0xaa   : > { %4005 = vmatprep.subr.mxu1 %v4740_v0  ;;  %4015 = vmatpush3.msra.mxu0 %v5085_v45  ;;  %v1692_v35 = vand.u32 4294901760, %v1691_v33 }
  0xab   : > { %4006 = vmatpush3.msra.mxu1 %v5010_v9  ;;  %4007 = vmatprep.mubr.msk.f32.mxu1 %vm4741_vm0, %v4740_v0  ;;  %v5181_v9 = vand.u32 4294901760, %v1050_v4  ;;  %v1060_v11 = vsub.f32 %v5147_v62, %v5170_v6 }
  0xac   : > { %4016 = vmatprep.subr.mxu0 %v4740_v0  ;;  %4008 = vmatmul.mubr.f32.vlgmr.msra.gmra.mxu1 %v5015_v12  ;;  %v1117_v12 = vand.u32 4294901760, %v1116_v8 }
  0xad   : > { %4017 = vmatpush3.msra.mxu0 %v5100_v49  ;;  %4018 = vmatprep.mubr.msk.f32.mxu0 %vm4741_vm0, %v4740_v0  ;;  %v5195_v13 = vand.u32 4294901760, %v1060_v11 }
  0xae   : > { %4027 = vmatprep.subr.mxu1 %v4740_v0  ;;  %4019 = vmatmul.mubr.f32.vlgmr.msra.gmra.mxu0 %v5159_v2 }
  0xaf   : > { %4028 = vmatpush3.msra.mxu1 %v1096_v3  ;;  %4021 = vmatprep.mubr.msk.f32.mxu0 %vm4741_vm0, %v4740_v0 }
  0xb0   : > { %4029 = vmatprep.subr.mxu1 %v4740_v0  ;;  %4044 = vmatprep.subr.mxu0 %v4740_v0 }
  0xb1   : > { %4030 = vmatpush3.msra.mxu1 %v1103_v7  ;;  %4045 = vmatpush3.msra.mxu0 %v5083_v44 }
  0xb2   : > { %4031 = vmatprep.subr.mxu1 %v4740_v0  ;;  %4022 = vmatmul.mubr.f32.gmra.mxu0 %v5181_v9 }
  0xb3   : > { %4032 = vmatpush3.msra.mxu1 %v1110_v10  ;;  %4035 = vmatprep.mubr.msk.f32.mxu1 %vm4741_vm0, %v4740_v0 }
  0xb4   : > { %4033 = vmatprep.subr.mxu1 %v4740_v0  ;;  %4046 = vmatprep.subr.mxu0 %v4740_v0 }
  0xb5   : > { %4034 = vmatpush3.msra.mxu1 %v1117_v12  ;;  %4024 = vmatprep.mubr.msk.f32.mxu0 %vm4741_vm0, %v4740_v0 }
  0xb6   : > { %4036 = vmatmul.mubr.f32.vlgmr.msra.gmra.mxu1 %v5070_v38  ;;  %4047 = vmatpush3.msra.mxu0 %v5098_v48 }
  0xb7   : > { %4061 = vmatprep.subr.mxu1 %v4740_v0  ;;  %4025 = vmatmul.mubr.f32.gmra.mxu0 %v5195_v13 }
  0xb8   : > { %4048 = vmatprep.subr.mxu0 %v4740_v0  ;;  %4062 = vmatpush3.msra.mxu1 %v5068_v37 }
  0xb9   : > { %4049 = vmatpush3.msra.mxu0 %v5111_v51  ;;  %4038 = vmatprep.mubr.msk.f32.mxu1 %vm4741_vm0, %v4740_v0 }
  0xba   : > { %4050 = vmatprep.subr.mxu0 %v4740_v0  ;;  %4063 = vmatprep.subr.mxu1 %v4740_v0 }
  0xbb   : > { %4039 = vmatmul.mubr.f32.gmra.mxu1 %v5090_v47  ;;  %4051 = vmatpush3.msra.mxu0 %v5128_v56 }
  0xbc   : > { %4052 = vmatprep.mubr.msk.f32.mxu0 %vm4741_vm0, %v4740_v0  ;;  %4064 = vmatpush3.msra.mxu1 %v5076_v41 }
  0xbd   : > { %4053 = vmatmul.mubr.f32.vlgmr.msra.gmra.mxu0 %v5088_v46  ;;  %4065 = vmatprep.subr.mxu1 %v4740_v0 }
  0xbe   : > { %4041 = vmatprep.mubr.msk.f32.mxu1 %vm4741_vm0, %v4740_v0  ;;  %4066 = vmatpush3.msra.mxu1 %v5085_v45 }
  0xbf   : > { %4055 = vmatprep.mubr.msk.f32.mxu0 %vm4741_vm0, %v4740_v0  ;;  %4042 = vmatmul.mubr.f32.gmra.mxu1 %v5123_v55 }
  0xc0   : > { %4067 = vmatprep.subr.mxu1 %v4740_v0  ;;  %4078 = vmatprep.subr.mxu0 %v4740_v0 }
  0xc1   : > { %4056 = vmatmul.mubr.f32.gmra.mxu0 %v5118_v54  ;;  %4068 = vmatpush3.msra.mxu1 %v5100_v49 }
  0xc2   : > { %4079 = vmatpush3.msra.mxu0 %v1094_v53  ;;  %4069 = vmatprep.mubr.msk.f32.mxu1 %vm4741_vm0, %v4740_v0 }
  0xc3   : > { %4080 = vmatprep.subr.mxu0 %v4740_v0  ;;  %4058 = vmatprep.mubr.msk.f32.mxu0 %vm4741_vm0, %v4740_v0 }
  0xc4   : > { %4070 = vmatmul.mubr.f32.vlgmr.msra.gmra.mxu1 %v5114_v52  ;;  %4081 = vmatpush3.msra.mxu0 %v1101_v57 }
  0xc5   : > { %4095 = vmatprep.subr.mxu1 %v4740_v0  ;;  %4059 = vmatmul.mubr.f32.gmra.mxu0 %v5147_v62 }
  0xc6   : > { %4082 = vmatprep.subr.mxu0 %v4740_v0  ;;  %4096 = vmatpush3.msra.mxu1 %v5068_v37  ;;  %v1699_v37 = vand.u32 4294901760, %v1698_v36 }
  0xc7   : > { %4083 = vmatpush3.msra.mxu0 %v1108_v61  ;;  %4072 = vmatprep.mubr.msk.f32.mxu1 %vm4741_vm0, %v4740_v0 }
  0xc8   : > { %4084 = vmatprep.subr.mxu0 %v4740_v0  ;;  %4097 = vmatprep.subr.mxu1 %v4740_v0 }
  0xc9   : > { %4073 = vmatmul.mubr.f32.gmra.mxu1 %v5141_v60  ;;  %4085 = vmatpush3.msra.mxu0 %v1115_v1 }
  0xca   : > { %4086 = vmatprep.mubr.msk.f32.mxu0 %vm4741_vm0, %v4740_v0  ;;  %4098 = vmatpush3.msra.mxu1 %v5076_v41 }
  0xcb   : > { %4087 = vmatmul.mubr.f32.vlgmr.msra.gmra.mxu0 %v5070_v38  ;;  %4099 = vmatprep.subr.mxu1 %v4740_v0 }
  0xcc   : > { %4075 = vmatprep.mubr.msk.f32.mxu1 %vm4741_vm0, %v4740_v0  ;;  %4100 = vmatpush3.msra.mxu1 %v5085_v45 }
  0xcd   : > { %4089 = vmatprep.mubr.msk.f32.mxu0 %vm4741_vm0, %v4740_v0  ;;  %4076 = vmatmul.mubr.f32.gmra.mxu1 %v5170_v6 }
  0xce   : > { %4101 = vmatprep.subr.mxu1 %v4740_v0  ;;  %4103 = vmatprep.mubr.msk.f32.mxu1 %vm4741_vm0, %v4740_v0 }
  0xcf   : > { %4090 = vmatmul.mubr.f32.gmra.mxu0 %v5090_v47  ;;  %4102 = vmatpush3.msra.mxu1 %v5100_v49 }
  0xd0   : > { %4092 = vmatprep.mubr.msk.f32.mxu0 %vm4741_vm0, %v4740_v0  ;;  %4112 = vmatprep.subr.mxu0 %v4740_v0 }
  0xd1   : > { %4129 = vmatprep.subr.mxu1 %v4740_v0  ;;  %4104 = vmatmul.mubr.f32.vlgmr.msra.gmra.mxu1 %v5070_v38 }
  0xd2   : > { %4106 = vmatprep.mubr.msk.f32.mxu1 %vm4741_vm0, %v4740_v0  ;;  %4113 = vmatpush3.msra.mxu0 %v5283_v15 }
  0xd3   : > { %4093 = vmatmul.mubr.f32.gmra.mxu0 %v5123_v55  ;;  %4114 = vmatprep.subr.mxu0 %v4740_v0 }
  0xd4   : > { %4120 = vmatprep.mubr.msk.f32.mxu0 %vm4741_vm0, %v4740_v0  ;;  %4115 = vmatpush3.msra.mxu0 %v5290_v18 }
  0xd5   : > { %4107 = vmatmul.mubr.f32.gmra.mxu1 %v5090_v47  ;;  %4116 = vmatprep.subr.mxu0 %v4740_v0 }
  0xd6   : > { %4109 = vmatprep.mubr.msk.f32.mxu1 %vm4741_vm0, %v4740_v0  ;;  %4117 = vmatpush3.msra.mxu0 %v5297_v22 }
  0xd7   : > { %4118 = vmatprep.subr.mxu0 %v4740_v0  ;;  %4130 = vmatpush3.msra.mxu1 %v1678_v28 }
  0xd8   : > { %4119 = vmatpush3.msra.mxu0 %v5306_v27  ;;  %4131 = vmatprep.subr.mxu1 %v4740_v0 }
  0xd9   : > { %4110 = vmatmul.mubr.f32.gmra.mxu1 %v5123_v55  ;;  %4121 = vmatmul.mubr.f32.vlgmr.msra.gmra.mxu0 %v5159_v2 }
  0xda   : > { %4137 = vmatprep.mubr.msk.f32.mxu1 %vm4741_vm0, %v4740_v0  ;;  %4146 = vmatprep.subr.mxu0 %v4740_v0 }
  0xdb   : > { %4123 = vmatprep.mubr.msk.f32.mxu0 %vm4741_vm0, %v4740_v0  ;;  %4147 = vmatpush3.msra.mxu0 %v5287_v16 }
  0xdc   : > { %4132 = vmatpush3.msra.mxu1 %v1685_v32  ;;  %4148 = vmatprep.subr.mxu0 %v4740_v0 }
  0xdd   : > { %4133 = vmatprep.subr.mxu1 %v4740_v0  ;;  %4124 = vmatmul.mubr.f32.gmra.mxu0 %v5181_v9 }
  0xde   : > { %4134 = vmatpush3.msra.mxu1 %v1692_v35  ;;  %4126 = vmatprep.mubr.msk.f32.mxu0 %vm4741_vm0, %v4740_v0 }
  0xdf   : > { %4135 = vmatprep.subr.mxu1 %v4740_v0  ;;  %4149 = vmatpush3.msra.mxu0 %v5294_v20 }
  0xe0   : > { %4136 = vmatpush3.msra.mxu1 %v1699_v37  ;;  %4150 = vmatprep.subr.mxu0 %v4740_v0 }
  0xe1   : > { %4138 = vmatmul.mubr.f32.vlgmr.msra.gmra.mxu1 %v5070_v38  ;;  %4163 = vmatprep.subr.mxu1 %v4740_v0 }
  0xe2   : > { %4140 = vmatprep.mubr.msk.f32.mxu1 %vm4741_vm0, %v4740_v0  ;;  %4164 = vmatpush3.msra.mxu1 %v5283_v15 }
  0xe3   : > { %4127 = vmatmul.mubr.f32.gmra.mxu0 %v5195_v13  ;;  %4165 = vmatprep.subr.mxu1 %v4740_v0 }
  0xe4   : > { %4151 = vmatpush3.msra.mxu0 %v5303_v25  ;;  %4166 = vmatpush3.msra.mxu1 %v5290_v18 }
  0xe5   : > { %4141 = vmatmul.mubr.f32.gmra.mxu1 %v5090_v47  ;;  %4152 = vmatprep.subr.mxu0 %v4740_v0 }
  0xe6   : > { %4143 = vmatprep.mubr.msk.f32.mxu1 %vm4741_vm0, %v4740_v0  ;;  %4167 = vmatprep.subr.mxu1 %v4740_v0 }
  0xe7   : > { %4153 = vmatpush3.msra.mxu0 %v5312_v30  ;;  %4154 = vmatprep.mubr.msk.f32.mxu0 %vm4741_vm0, %v4740_v0 }
  0xe8   : > { %4168 = vmatpush3.msra.mxu1 %v5297_v22  ;;  %4155 = vmatmul.mubr.f32.vlgmr.msra.gmra.mxu0 %v5088_v46 }
  0xe9   : > { %4144 = vmatmul.mubr.f32.gmra.mxu1 %v5123_v55  ;;  %4169 = vmatprep.subr.mxu1 %v4740_v0 }
  0xea   : > { %4170 = vmatpush3.msra.mxu1 %v5306_v27  ;;  %4171 = vmatprep.mubr.msk.f32.mxu1 %vm4741_vm0, %v4740_v0 }
  0xeb   : > { %4157 = vmatprep.mubr.msk.f32.mxu0 %vm4741_vm0, %v4740_v0  ;;  %4180 = vmatprep.subr.mxu0 %v4740_v0 }
  0xec   : > { %4158 = vmatmul.mubr.f32.gmra.mxu0 %v5118_v54  ;;  %4197 = vmatprep.subr.mxu1 %v4740_v0 }
  0xed   : > { %4172 = vmatmul.mubr.f32.vlgmr.msra.gmra.mxu1 %v5114_v52  ;;  %4181 = vmatpush3.msra.mxu0 %v1676_v21  ;;  %v454_v52 = vld [vmem:[%s5712_s6] sm:$0x1] }
  0xee   : > { %4174 = vmatprep.mubr.msk.f32.mxu1 %vm4741_vm0, %v4740_v0  ;;  %4182 = vmatprep.subr.mxu0 %v4740_v0 }
  0xef   : > { %4160 = vmatprep.mubr.msk.f32.mxu0 %vm4741_vm0, %v4740_v0  ;;  %4183 = vmatpush3.msra.mxu0 %v1683_v26 }
  0xf0   : > { %4198 = vmatpush3.msra.mxu1 %v5283_v15  ;;  %4161 = vmatmul.mubr.f32.gmra.mxu0 %v5147_v62  ;;  %v3747_v15 = vld [vmem:[%s5713_s7] ss:$0 sm:$0xff] }
  0xf1   : > { %4175 = vmatmul.mubr.f32.gmra.mxu1 %v5141_v60  ;;  %4184 = vmatprep.subr.mxu0 %v4740_v0 }
  0xf2   : > { %4199 = vmatprep.subr.mxu1 %v4740_v0  ;;  %4177 = vmatprep.mubr.msk.f32.mxu1 %vm4741_vm0, %v4740_v0 }
  0xf3   : > { %4185 = vmatpush3.msra.mxu0 %v1690_v31  ;;  %4200 = vmatpush3.msra.mxu1 %v5290_v18 }
  0xf4   : > { %4186 = vmatprep.subr.mxu0 %v4740_v0  ;;  %4201 = vmatprep.subr.mxu1 %v4740_v0 }
  0xf5   : > { %4178 = vmatmul.mubr.f32.gmra.mxu1 %v5170_v6  ;;  %4187 = vmatpush3.msra.mxu0 %v1697_v34  ;;  %v2121_v6 = vlaneseq }
  0xf6   : > { %4188 = vmatprep.mubr.msk.f32.mxu0 %vm4741_vm0, %v4740_v0  ;;  %4202 = vmatpush3.msra.mxu1 %v5297_v22 }
  0xf7   : > { %4189 = vmatmul.mubr.f32.vlgmr.msra.gmra.mxu0 %v5070_v38  ;;  %4203 = vmatprep.subr.mxu1 %v4740_v0  ;;  %v2122_v12 = vshrl.u32 %v2121_v6, 7 }
  0xf8   : > { %4204 = vmatpush3.msra.mxu1 %v5306_v27  ;;  %4205 = vmatprep.mubr.msk.f32.mxu1 %vm4741_vm0, %v4740_v0  ;;  %v5412_v27 = vld [vmem:[#allocation5] sm:$0xf] }
  0xf9   : > { %4206 = vmatmul.mubr.f32.vlgmr.msra.gmra.mxu1 %v5070_v38  ;;  %4191 = vmatprep.mubr.msk.f32.mxu0 %vm4741_vm0, %v4740_v0  ;;  %v2123_v19 = vsub.s32 0, %v2122_v12 }
  0xfa   : > { %4208 = vmatprep.mubr.msk.f32.mxu1 %vm4741_vm0, %v4740_v0  ;;  %4214 = vmatprep.subr.mxu0 %v4740_v0 }
  0xfb   : > { %4192 = vmatmul.mubr.f32.gmra.mxu0 %v5090_v47  ;;  %4223 = vmatprep.subr.mxu1 %v4740_v0 }
  0xfc   : > { %4194 = vmatprep.mubr.msk.f32.mxu0 %vm4741_vm0, %v4740_v0 }
  0xfd   : > { %4209 = vmatmul.mubr.f32.gmra.mxu1 %v5090_v47 }
  0xfe   : > { %4211 = vmatprep.mubr.msk.f32.mxu1 %vm4741_vm0, %v4740_v0 }
  0xff   : > { %4195 = vmatmul.mubr.f32.gmra.mxu0 %v5123_v55 }
 0x100   : > { %4220 = vmatprep.mubr.msk.f32.mxu0 %vm4741_vm0, %v4740_v0 }
 0x101   : > { %4212 = vmatmul.mubr.f32.gmra.mxu1 %v5123_v55 }
 0x102   : > { %4229 = vmatprep.mubr.msk.f32.mxu1 %vm4741_vm0, %v4740_v0 }
 0x153   : > { %v534_v38 = vpop.f32.mrf.mxu0 }
 0x154   : > { %v535_v55 = vadd.f32 %v534_v38, %v454_v52 }
 0x155   : > { %v3954_v39 = vpop.f32.mrf.mxu0 }
 0x157   : > { %v625_v40 = vpop.f32.mrf.mxu1 }
 0x158   : > { %v626_v59 = vadd.f32 %v625_v40, %v535_v55 }
 0x159   : > { %v3965_v41 = vpop.f32.mrf.mxu1 }
 0x15b   : > { %v705_v42 = vpop.f32.mrf.mxu0 }
 0x15c   : > { %v706_v1 = vadd.f32 %v705_v42, %v626_v59 }
 0x15d   : > { %v3976_v43 = vpop.f32.mrf.mxu0 }
 0x162   : > { %v782_v44 = vpop.f32.mrf.mxu1 }
 0x163   : > { %v783_v3 = vadd.f32 %v782_v44, %v706_v1 }
 0x164   : > { %v3987_v45 = vpop.f32.mrf.mxu1 }
 0x165   : > { %v865_v46 = vpop.f32.mrf.mxu0 }
 0x166   : > { %v866_v9 = vadd.f32 %v865_v46, %v783_v3 }
 0x167   : > { %v3998_v47 = vpop.f32.mrf.mxu0 }
 0x16c   : > { %v940_v48 = vpop.f32.mrf.mxu1 }
 0x16d   : > { %v941_v11 = vadd.f32 %v940_v48, %v866_v9 }
 0x16e   : > { %v1043_v49 = vpop.f32.mrf.mxu0  ;;  %v4009_v50 = vpop.f32.mrf.mxu1 }
 0x16f   : > { %v944_v18 = vmul.f32 0.35355338, %v941_v11  ;;  %v1044_v20 = vadd.f32 %v3747_v15, %v1043_v49 }
 0x170   : > { %v4020_v51 = vpop.f32.mrf.mxu0 }
 0x171   : > { %v2124_v25 = vrot.slane %v944_v18, %v2123_v19 }
 0x172   : > { %v1053_v53 = vpop.f32.mrf.mxu0 }
 0x173   : > { %v1054_v21 = vadd.f32 %v3747_v15, %v1053_v53  ;;  %v2125_v36 = vmul.f32 %v2124_v25, %v5412_v27 }
 0x174   : > { %v4023_v54 = vpop.f32.mrf.mxu0 }
 0x175   : > { %v2127_v47 = vsel %vm455_vm1, %v2125_v36, 0 }
 0x176   : > { %v1154_v56 = vpop.f32.mrf.mxu1  ;;  %v5416_v53 = vand.u32 4294901760, %v2127_v47 }
 0x177   : > { %v1063_v57 = vpop.f32.mrf.mxu0  ;;  %v1155_v28 = vadd.f32 %v1154_v56, %v1044_v20 }
 0x178   : > { %v4037_v58 = vpop.f32.mrf.mxu1  ;;  %v1064_v29 = vadd.f32 %v3747_v15, %v1063_v57 }
 0x179   : > { %v4026_v60 = vpop.f32.mrf.mxu0 }
 0x17b   : > { %v1160_v61 = vpop.f32.mrf.mxu1 }
 0x17c   : > { %v1161_v30 = vadd.f32 %v1160_v61, %v1054_v21  ;;  %v5423_v61 = vsub.f32 %v2127_v47, %v5416_v53 }
 0x17d   : > { %v1246_v62 = vpop.f32.mrf.mxu0  ;;  %v4040_v63 = vpop.f32.mrf.mxu1 }
 0x17e   : > { %v1247_v33 = vadd.f32 %v1246_v62, %v1155_v28  ;;  %v3748_v28 = vld [vmem:[%s5714_s8] ss:$0 sm:$0xff] }
 0x17f   : > { %v4054_v2 = vpop.f32.mrf.mxu0  ;;  %v1166_v4 = vpop.f32.mrf.mxu1 }
 0x180   : > { %v1167_v38 = vadd.f32 %v1166_v4, %v1064_v29  ;;  %v2208_v4 = vand.u32 4294901760, %v5423_v61 }
 0x181   : > { %v1253_v5 = vpop.f32.mrf.mxu0  ;;  %v4043_v7 = vpop.f32.mrf.mxu1 }
 0x182   : > { %v1254_v34 = vadd.f32 %v1253_v5, %v1161_v30 }
 0x183   : > { %v4057_v8 = vpop.f32.mrf.mxu0 }
 0x184   : > { %v1337_v10 = vpop.f32.mrf.mxu1 }
 0x185   : > { %v1260_v13 = vpop.f32.mrf.mxu0  ;;  %v1338_v39 = vadd.f32 %v1337_v10, %v1247_v33  ;;  %v2209_v10 = vsub.f32 %v5423_v61, %v2208_v4 }
 0x186   : > { %v4071_v14 = vpop.f32.mrf.mxu1  ;;  %v1261_v43 = vadd.f32 %v1260_v13, %v1167_v38 }
 0x187   : > { %v4060_v16 = vpop.f32.mrf.mxu0  ;;  %v2210_v15 = vand.u32 4294901760, %v2209_v10 }
 0x189   : > { %v1345_v17 = vpop.f32.mrf.mxu1 }
 0x18a   : > { %v1346_v40 = vadd.f32 %v1345_v17, %v1254_v34 }
 0x18b   : > { %v1436_v22 = vpop.f32.mrf.mxu0  ;;  %v4074_v23 = vpop.f32.mrf.mxu1 }
 0x18c   : > { %v1437_v44 = vadd.f32 %v1436_v22, %v1338_v39 }
 0x18d   : > { %v4088_v24 = vpop.f32.mrf.mxu0  ;;  %v1353_v26 = vpop.f32.mrf.mxu1 }
 0x18e   : > { %v1354_v49 = vadd.f32 %v1353_v26, %v1261_v43 }
 0x18f   : > { %v1442_v31 = vpop.f32.mrf.mxu0  ;;  %v4077_v32 = vpop.f32.mrf.mxu1 }
 0x190   : > { %v1443_v45 = vadd.f32 %v1442_v31, %v1346_v40 }
 0x191   : > { %v4091_v35 = vpop.f32.mrf.mxu0  ;;  %v1523_v37 = vpop.f32.mrf.mxu1 }
 0x192   : > { %v1524_v50 = vadd.f32 %v1523_v37, %v1437_v44 }
 0x193   : > { %v1448_v41 = vpop.f32.mrf.mxu0  ;;  %v4105_v42 = vpop.f32.mrf.mxu1 }
 0x194   : > { %v1449_v54 = vadd.f32 %v1448_v41, %v1354_v49  ;;  %v2130_v58 = vsel %vm455_vm1, %v1524_v50, 0 }
 0x195   : > { %v4094_v46 = vpop.f32.mrf.mxu0  ;;  %v1529_v48 = vpop.f32.mrf.mxu1  ;;  %v5426_v63 = vand.u32 4294901760, %v2130_v58 }
 0x196   : > { %v1530_v51 = vadd.f32 %v1529_v48, %v1443_v45 }
 0x197   : > { %v4108_v52 = vpop.f32.mrf.mxu1  ;;  %v5438_v5 = vsub.f32 %v2130_v58, %v5426_v63 }
 0x198   : > { %v2133_v55 = vsel %vm455_vm1, %v1530_v51, 0 }
 0x199   : > { %v5419_v56 = vand.u32 4294901760, %v2133_v55  ;;  %v1535_v57 = vpop.f32.mrf.mxu1  ;;  %v2259_v11 = vand.u32 4294901760, %v5438_v5  ;;  %v1625_v14 = vpop.f32.mrf.mxu0 }
 0x19a   : > { %v1536_v59 = vadd.f32 %v1535_v57, %v1449_v54  ;;  %v1626_v30 = vadd.f32 %v3748_v28, %v1625_v14 }
 0x19b   : > { %v4111_v60 = vpop.f32.mrf.mxu1  ;;  %v5429_v1 = vsub.f32 %v2133_v55, %v5419_v56  ;;  %v2260_v17 = vsub.f32 %v5438_v5, %v2259_v11  ;;  %v4122_v18 = vpop.f32.mrf.mxu0 }
 0x19c   : > { %v2136_v62 = vsel %vm455_vm1, %v1536_v59, 0 }
 0x19d   : > { %v5431_v2 = vand.u32 4294901760, %v2136_v62  ;;  %v2252_v7 = vand.u32 4294901760, %v5429_v1  ;;  %v1635_v19 = vpop.f32.mrf.mxu0  ;;  %v2261_v20 = vand.u32 4294901760, %v2260_v17 }
 0x19e   : > { %v1636_v36 = vadd.f32 %v3748_v28, %v1635_v19 }
 0x19f   : > { %v2244_v3 = vsub.f32 %v2136_v62, %v5431_v2  ;;  %4215 = vmatpush3.xpose.msra.mxu0 %v5431_v2  ;;  %v2253_v13 = vsub.f32 %v5429_v1, %v2252_v7  ;;  %v4125_v21 = vpop.f32.mrf.mxu0 }
 0x1a0   : > { %4216 = vmatprep.subr.mxu0 %v4740_v0 }
 0x1a1   : > { %v2245_v8 = vand.u32 4294901760, %v2244_v3  ;;  %v2254_v16 = vand.u32 4294901760, %v2253_v13  ;;  %v1736_v22 = vpop.f32.mrf.mxu1 }
 0x1a2   : > { %v1737_v35 = vadd.f32 %v1736_v22, %v1626_v30 }
 0x1a3   : > { %4217 = vmatpush3.xpose.msra.mxu0 %v5419_v56  ;;  %v2246_v9 = vsub.f32 %v2244_v3, %v2245_v8  ;;  %v4139_v23 = vpop.f32.mrf.mxu1  ;;  %v1645_v24 = vpop.f32.mrf.mxu0 }
 0x1a4   : > { %4218 = vmatprep.subr.mxu0 %v4740_v0  ;;  %v1646_v42 = vadd.f32 %v3748_v28, %v1645_v24 }
 0x1a5   : > { %v2247_v12 = vand.u32 4294901760, %v2246_v9  ;;  %v1742_v25 = vpop.f32.mrf.mxu1  ;;  %v4128_v26 = vpop.f32.mrf.mxu0 }
 0x1a6   : > { %v1743_v41 = vadd.f32 %v1742_v25, %v1636_v36 }
 0x1a7   : > { %4219 = vmatpush3.xpose.msra.mxu0 %v5426_v63  ;;  %4224 = vmatpush3.xpose.msra.mxu1 %v2247_v12  ;;  %v4142_v29 = vpop.f32.mrf.mxu1 }
 0x1a8   : > { %4225 = vmatprep.subr.mxu1 %v4740_v0  ;;  %4232 = vmatprep.subr.mxu0 %v4740_v0  ;;  %v1828_v31 = vpop.f32.mrf.mxu0 }
 0x1a9   : > { %v1748_v32 = vpop.f32.mrf.mxu1  ;;  %v1829_v43 = vadd.f32 %v1828_v31, %v1737_v35 }
 0x1aa   : > { %4221 = vmatmul.mubr.f32.vlgmr.msra.gmra.mxu0 %v2210_v15  ;;  %v4156_v33 = vpop.f32.mrf.mxu0  ;;  %v1749_v48 = vadd.f32 %v1748_v32, %v1646_v42 }
 0x1ab   : > { %4226 = vmatpush3.xpose.msra.mxu1 %v2254_v16  ;;  %4233 = vmatpush3.xpose.msra.mxu0 %v2244_v3  ;;  %v4145_v34 = vpop.f32.mrf.mxu1 }
 0x1ac   : > { %4227 = vmatprep.subr.mxu1 %v4740_v0  ;;  %4234 = vmatprep.subr.mxu0 %v4740_v0  ;;  %v1835_v37 = vpop.f32.mrf.mxu0 }
 0x1ad   : > { %4238 = vmatprep.mubr.msk.f32.mxu0 %vm4741_vm0, %v4740_v0  ;;  %v1919_v38 = vpop.f32.mrf.mxu1  ;;  %v1836_v50 = vadd.f32 %v1835_v37, %v1743_v41 }
 0x1ae   : > { %v4159_v39 = vpop.f32.mrf.mxu0  ;;  %v1920_v49 = vadd.f32 %v1919_v38, %v1829_v43 }
 0x1af   : > { %4228 = vmatpush3.xpose.msra.mxu1 %v2261_v20  ;;  %4235 = vmatpush3.xpose.msra.mxu0 %v5429_v1  ;;  %v4173_v40 = vpop.f32.mrf.mxu1 }
 0x1b0   : > { %4236 = vmatprep.subr.mxu0 %v4740_v0  ;;  %4241 = vmatprep.subr.mxu1 %v4740_v0  ;;  %v1842_v44 = vpop.f32.mrf.mxu0  ;;  %v2611_v40 = vand.u32 127, %v2121_v6 }
 0x1b1   : > { %v1927_v45 = vpop.f32.mrf.mxu1  ;;  %v1843_v57 = vadd.f32 %v1842_v44, %v1749_v48 }
 0x1b2   : > { %4230 = vmatmul.mubr.f32.vlgmr.msra.gmra.mxu1 %v5416_v53  ;;  %v4162_v46 = vpop.f32.mrf.mxu0  ;;  %v1928_v55 = vadd.f32 %v1927_v45, %v1836_v50  ;;  %vm2612_vm2 = vcmp.lt.s32.totalorder %v2611_v40, 17 }
 0x1b3   : > { %4237 = vmatpush3.xpose.msra.mxu0 %v5438_v5  ;;  %4242 = vmatpush3.xpose.msra.mxu1 %v5431_v2  ;;  %v4176_v47 = vpop.f32.mrf.mxu1 }
 0x1b4   : > { %4243 = vmatprep.subr.mxu1 %v4740_v0  ;;  %4250 = vmatprep.subr.mxu0 %v4740_v0 }
 0x1b5   : > { %4247 = vmatprep.mubr.msk.f32.mxu1 %vm4741_vm0, %v4740_v0  ;;  %v1935_v51 = vpop.f32.mrf.mxu1 }
 0x1b6   : > { %4239 = vmatmul.mubr.f32.vlgmr.msra.gmra.mxu0 %v5423_v61  ;;  %v1936_v1 = vadd.f32 %v1935_v51, %v1843_v57 }
 0x1b7   : > { %4244 = vmatpush3.xpose.msra.mxu1 %v5419_v56  ;;  %4251 = vmatpush3.xpose.msra.mxu0 %v2245_v8  ;;  %v4179_v52 = vpop.f32.mrf.mxu1  ;;  %v2018_v54 = vpop.f32.mrf.mxu0 }
 0x1b8   : > { %4245 = vmatprep.subr.mxu1 %v4740_v0  ;;  %4252 = vmatprep.subr.mxu0 %v4740_v0  ;;  %v2019_v58 = vadd.f32 %v2018_v54, %v1920_v49 }
 0x1b9   : > { %4256 = vmatprep.mubr.msk.f32.mxu0 %vm4741_vm0, %v4740_v0  ;;  %v4190_v59 = vpop.f32.mrf.mxu0  ;;  %v2105_v60 = vpop.f32.mrf.mxu1 }
 0x1ba   : > { %v2106_v61 = vadd.f32 %v2105_v60, %v2019_v58 }
 0x1bb   : > { %4246 = vmatpush3.xpose.msra.mxu1 %v5426_v63  ;;  %4253 = vmatpush3.xpose.msra.mxu0 %v2252_v7  ;;  %v2024_v62 = vpop.f32.mrf.mxu0 }
 0x1bc   : > { %4254 = vmatprep.subr.mxu0 %v4740_v0  ;;  %4259 = vmatprep.subr.mxu1 %v4740_v0  ;;  %v5499_v5 = vand.u32 4294901760, %v2106_v61 }
 0x1bd   : > { %v4193_v3 = vpop.f32.mrf.mxu0 }
 0x1be   : > { %4248 = vmatmul.mubr.f32.vlgmr.msra.gmra.mxu1 %v2208_v4  ;;  %v5504_v13 = vsub.f32 %v2106_v61, %v5499_v5 }
 0x1bf   : > { %4255 = vmatpush3.xpose.msra.mxu0 %v2259_v11  ;;  %4260 = vmatpush3.xpose.msra.mxu1 %v5431_v2  ;;  %v2025_v2 = vadd.f32 %v2024_v62, %v1928_v55 }
 0x1c0   : > { %4261 = vmatprep.subr.mxu1 %v4740_v0  ;;  %4265 = vmatprep.mubr.msk.f32.mxu1 %vm4741_vm0, %v4740_v0  ;;  %v2751_v18 = vand.u32 4294901760, %v5504_v13 }
 0x1c1   : > { %4268 = vmatprep.subr.mxu0 %v4740_v0 }
 0x1c2   : > { %4257 = vmatmul.mubr.f32.vlgmr.msra.gmra.mxu0 %v5416_v53  ;;  %v2752_v22 = vsub.f32 %v5504_v13, %v2751_v18 }
 0x1c3   : > { %4262 = vmatpush3.xpose.msra.mxu1 %v5419_v56  ;;  %4274 = vmatprep.mubr.msk.f32.mxu0 %vm4741_vm0, %v4740_v0  ;;  %v4207_v56 = vpop.f32.mrf.mxu1 }
 0x1c4   : > { %4263 = vmatprep.subr.mxu1 %v4740_v0  ;;  %v2753_v26 = vand.u32 4294901760, %v2752_v22  ;;  %v3114_v56 = vld [vmem:[#allocation11 + $0x18] sm:$0xff] }
 0x1c5   : > { %v2111_v4 = vpop.f32.mrf.mxu1 }
 0x1c6   : > { %v2112_v7 = vadd.f32 %v2111_v4, %v2025_v2  ;;  %v3113_v2 = vld [vmem:[#allocation11 + $0x10] sm:$0xff] }
 0x1c7   : > { %4264 = vmatpush3.xpose.msra.mxu1 %v5426_v63  ;;  %v2030_v63 = vpop.f32.mrf.mxu0  ;;  %v4210_v8 = vpop.f32.mrf.mxu1  ;;  %v5580_v4 = vand.u32 4294901760, %v3113_v2 }
 0x1c8   : > { %4277 = vmatprep.subr.mxu1 %v4740_v0  ;;  %v5501_v9 = vand.u32 4294901760, %v2112_v7  ;;  %v2031_v10 = vadd.f32 %v2030_v63, %v1936_v1  ;;  %v5575_v1 = vand.u32 4294901760, %v3114_v56 }
 0x1c9   : > { %v2117_v11 = vpop.f32.mrf.mxu1  ;;  %v4196_v12 = vpop.f32.mrf.mxu0  ;;  %v5586_v63 = vsub.f32 %v3113_v2, %v5580_v4 }
 0x1ca   : > { %4266 = vmatmul.mubr.f32.vlgmr.msra.gmra.mxu1 %v5416_v53  ;;  %v5507_v53 = vsub.f32 %v2112_v7, %v5501_v9  ;;  %v2118_v14 = vadd.f32 %v2117_v11, %v2031_v10  ;;  %v5578_v3 = vsub.f32 %v3114_v56, %v5575_v1 }
 0x1cb   : > { %4283 = vmatprep.mubr.msk.f32.mxu1 %vm4741_vm0, %v4740_v0  ;;  %v4213_v15 = vpop.f32.mrf.mxu1  ;;  %v3232_v11 = vand.u32 4294901760, %v5586_v63 }
 0x1cc   : > { %v2744_v16 = vand.u32 4294901760, %v5507_v53  ;;  %v5510_v17 = vand.u32 4294901760, %v2118_v14  ;;  %v3225_v7 = vand.u32 4294901760, %v5578_v3 }
 0x1ce   : > { %v5514_v19 = vsub.f32 %v2118_v14, %v5510_v17  ;;  %4269 = vmatpush3.msra.mxu0 %v5510_v17  ;;  %v2745_v20 = vsub.f32 %v5507_v53, %v2744_v16  ;;  %v3226_v10 = vsub.f32 %v5578_v3, %v3225_v7  ;;  %v3233_v14 = vsub.f32 %v5586_v63, %v3232_v11 }
 0x1cf   : > { %4270 = vmatprep.subr.mxu0 %v4740_v0 }
 0x1d0   : > { %v2737_v21 = vand.u32 4294901760, %v5514_v19  ;;  %4271 = vmatpush3.msra.mxu0 %v5501_v9  ;;  %v2746_v25 = vand.u32 4294901760, %v2745_v20 }
 0x1d1   : > { %4272 = vmatprep.subr.mxu0 %v4740_v0 }
 0x1d2   : > { %v2738_v23 = vsub.f32 %v5514_v19, %v2737_v21  ;;  %4273 = vmatpush3.msra.mxu0 %v5499_v5 }
 0x1d3   : > { %4286 = vmatprep.subr.mxu0 %v4740_v0 }
 0x1d4   : > { %v2739_v24 = vand.u32 4294901760, %v2738_v23 }
 0x1d6   : > { %4278 = vmatpush3.msra.mxu1 %v2739_v24 }
 0x1d7   : > { %4279 = vmatprep.subr.mxu1 %v4740_v0 }
 0x1d8   : > { %4280 = vmatpush3.msra.mxu1 %v2746_v25 }
 0x1d9   : > { %4281 = vmatprep.subr.mxu1 %v4740_v0 }
 0x1da   : > { %4282 = vmatpush3.msra.mxu1 %v2753_v26 }
 0x1db   : > { %4295 = vmatprep.subr.mxu1 %v4740_v0 }
 0x26a   : > { %v2212_v28 = vpop.f32.mrf.mxu0 }
 0x26c   : > { %v4222_v29 = vpop.f32.mrf.mxu0 }
 0x272   : > { %v2298_v30 = vpop.f32.mrf.mxu1 }
 0x273   : > { %v2299_v37 = vadd.f32 %v2298_v30, %v2212_v28 }
 0x274   : > { %v4231_v31 = vpop.f32.mrf.mxu1 }
 0x276   : > { %v2376_v32 = vpop.f32.mrf.mxu0 }
 0x277   : > { %v2377_v39 = vadd.f32 %v2376_v32, %v2299_v37 }
 0x278   : > { %v4240_v33 = vpop.f32.mrf.mxu0 }
 0x27e   : > { %v2452_v34 = vpop.f32.mrf.mxu1 }
 0x27f   : > { %v2453_v41 = vadd.f32 %v2452_v34, %v2377_v39 }
 0x280   : > { %v4249_v35 = vpop.f32.mrf.mxu1 }
 0x282   : > { %v2532_v36 = vpop.f32.mrf.mxu0 }
 0x283   : > { %v2533_v42 = vadd.f32 %v2532_v36, %v2453_v41 }
 0x284   : > { %v4258_v38 = vpop.f32.mrf.mxu0 }
 0x28a   : > { %v2606_v43 = vpop.f32.mrf.mxu1 }
 0x28b   : > { %v2607_v44 = vadd.f32 %v2606_v43, %v2533_v42 }
 0x28c   : > { %v4267_v45 = vpop.f32.mrf.mxu1 }
 0x28d   : > { %v2613_v46 = vsel %vm2612_vm2, %v2607_v44, -1e+30 }
 0x28e   : > { %v2615_v47 = vsel %vm2614_vm3, %v2613_v46, -inf }
 0x28f   : > { %2616 = vmax.xlane.f32.xlu0 %v2615_v47 }
 0x318   : > { %v2617_v48 = vpop.xlane.xlu0 %2616 }
 0x319   : > { %v2618_v49 = vsub.f32 %v2613_v46, %v2617_v48 }
 0x31b   : > { %v2619_v50 = vmul.f32 1.442695, %v2618_v49 }
 0x31d   : > { %4492 = vpow2.f32 %v2619_v50 }
 0x32a   : > { %v4493_v51 = vpop.eup %4492 }
 0x32b   : > { %v2621_v52 = vsel %vm2614_vm3, %v4493_v51, 0.0 }
 0x32c   : > { %2622 = vadd.xlane.f32.xlu0 %v2621_v52 }
 0x3b5   : > { %v2623_v54 = vpop.xlane.xlu0 %2622 }
 0x3b6   : > { %4494 = vrcp.f32 %v2623_v54 }
 0x3c3   : > { %v4495_v6 = vpop.eup %4494 }
 0x3c4   : > { %v2625_v55 = vmul.f32 %v4495_v6, %v4493_v51 }
 0x3c6   : > { %v2628_v57 = vsel %vm2626_vm4, %v2625_v55, 0 }
 0x3c7   : > { %v2698_v58 = vand.u32 4294901760, %v2628_v57 }
 0x3c9   : > { %v2699_v59 = vsub.f32 %v2628_v57, %v2698_v58  ;;  %4284 = vmatmul.mubr.f32.vlgmr.msra.gmra.mxu1 %v2698_v58 }
 0x3ca   : > { %4296 = vmatpush3.msra.mxu1 %v5510_v17  ;;  %4301 = vmatprep.mubr.msk.f32.mxu1 %vm4741_vm0, %v4740_v0 }
 0x3cb   : > { %4297 = vmatprep.subr.mxu1 %v4740_v0  ;;  %v2700_v60 = vand.u32 4294901760, %v2699_v59 }
 0x3cc   : > { %4298 = vmatpush3.msra.mxu1 %v5501_v9 }
 0x3cd   : > { %4299 = vmatprep.subr.mxu1 %v4740_v0  ;;  %v2701_v61 = vsub.f32 %v2699_v59, %v2700_v60 }
 0x3ce   : > { %4300 = vmatpush3.msra.mxu1 %v5499_v5 }
 0x3cf   : > { %4302 = vmatmul.mubr.f32.vlgmr.msra.gmra.mxu1 %v2700_v60  ;;  %4313 = vmatprep.subr.mxu1 %v4740_v0  ;;  %v2702_v62 = vand.u32 4294901760, %v2701_v61  ;;  %v3115_v61 = vld [vmem:[%s5715_s9] sm:$0x1] }
 0x3d0   : > { %4314 = vmatpush3.msra.mxu1 %v5510_v17  ;;  %4319 = vmatprep.mubr.msk.f32.mxu1 %vm4741_vm0, %v4740_v0  ;;  %v3234_v17 = vand.u32 4294901760, %v3233_v14 }
 0x3d1   : > { %4315 = vmatprep.subr.mxu1 %v4740_v0  ;;  %4275 = vmatmul.mubr.f32.vlgmr.msra.gmra.mxu0 %v2702_v62 }
 0x3d2   : > { %4287 = vmatpush3.msra.mxu0 %v5514_v19  ;;  %4316 = vmatpush3.msra.mxu1 %v5501_v9  ;;  %v3111_v9 = vld [vmem:[#allocation11] sm:$0xff] }
 0x3d3   : > { %4288 = vmatprep.subr.mxu0 %v4740_v0  ;;  %4317 = vmatprep.subr.mxu1 %v4740_v0 }
 0x3d4   : > { %4289 = vmatpush3.msra.mxu0 %v5507_v53  ;;  %4318 = vmatpush3.msra.mxu1 %v5499_v5  ;;  %v3112_v5 = vld [vmem:[#allocation11 + $0x8] sm:$0xff]  ;;  %v3227_v53 = vand.u32 4294901760, %v3226_v10 }
 0x3d5   : > { %4290 = vmatprep.subr.mxu0 %v4740_v0  ;;  %4320 = vmatmul.mubr.f32.vlgmr.msra.gmra.mxu1 %v2698_v58  ;;  %v5588_v8 = vand.u32 4294901760, %v3112_v5 }
 0x3d6   : > { %4291 = vmatpush3.msra.mxu0 %v5504_v13  ;;  %4292 = vmatprep.mubr.msk.f32.mxu0 %vm4741_vm0, %v4740_v0  ;;  %v5599_v13 = vand.u32 4294901760, %v3111_v9 }
 0x3d7   : > { %4293 = vmatmul.mubr.f32.vlgmr.msra.gmra.mxu0 %v2699_v59  ;;  %4304 = vmatprep.subr.mxu0 %v4740_v0  ;;  %v5597_v12 = vsub.f32 %v3112_v5, %v5588_v8 }
 0x3d8   : > { %4305 = vmatpush3.msra.mxu0 %v2737_v21  ;;  %4310 = vmatprep.mubr.msk.f32.mxu0 %vm4741_vm0, %v4740_v0 }
 0x3d9   : > { %4306 = vmatprep.subr.mxu0 %v4740_v0  ;;  %4333 = vmatprep.subr.mxu1 %v4740_v0  ;;  %v3239_v15 = vand.u32 4294901760, %v5597_v12 }
 0x3da   : > { %4307 = vmatpush3.msra.mxu0 %v2744_v16  ;;  %4341 = vmatprep.mubr.msk.f32.mxu1 %vm4741_vm0, %v4740_v0  ;;  %v5608_v16 = vsub.f32 %v3111_v9, %v5599_v13 }
 0x3db   : > { %4308 = vmatprep.subr.mxu0 %v4740_v0  ;;  %4334 = vmatpush3.msra.mxu1 %v3227_v53 }
 0x3dc   : > { %4309 = vmatpush3.msra.mxu0 %v2751_v18  ;;  %v3240_v18 = vsub.f32 %v5597_v12, %v3239_v15  ;;  %v3246_v19 = vand.u32 4294901760, %v5608_v16  ;;  %4335 = vmatprep.subr.mxu1 %v4740_v0 }
 0x3dd   : > { %4311 = vmatmul.mubr.f32.vlgmr.msra.gmra.mxu0 %v2698_v58  ;;  %4322 = vmatprep.subr.mxu0 %v4740_v0 }
 0x3de   : > { %4330 = vmatprep.mubr.msk.f32.mxu0 %vm4741_vm0, %v4740_v0  ;;  %4323 = vmatpush3.msra.mxu0 %v5575_v1  ;;  %v3241_v20 = vand.u32 4294901760, %v3240_v18  ;;  %v3247_v21 = vsub.f32 %v5608_v16, %v3246_v19 }
 0x3df   : > { %4324 = vmatprep.subr.mxu0 %v4740_v0  ;;  %4336 = vmatpush3.msra.mxu1 %v3234_v17 }
 0x3e0   : > { %4325 = vmatpush3.msra.mxu0 %v5580_v4  ;;  %4337 = vmatprep.subr.mxu1 %v4740_v0  ;;  %v3248_v22 = vand.u32 4294901760, %v3247_v21 }
 0x3e1   : > { %4326 = vmatprep.subr.mxu0 %v4740_v0  ;;  %4338 = vmatpush3.msra.mxu1 %v3241_v20 }
 0x3e2   : > { %4327 = vmatpush3.msra.mxu0 %v5588_v8  ;;  %4339 = vmatprep.subr.mxu1 %v4740_v0 }
 0x3e3   : > { %4328 = vmatprep.subr.mxu0 %v4740_v0  ;;  %4340 = vmatpush3.msra.mxu1 %v3248_v22 }
 0x3e4   : > { %4329 = vmatpush3.msra.mxu0 %v5599_v13  ;;  %4355 = vmatprep.subr.mxu1 %v4740_v0 }
 0x3e5   : > { %4344 = vmatprep.subr.mxu0 %v4740_v0 }
 0x489   : > { %v2790_v23 = vpop.f32.mrf.mxu1 }
 0x48b   : > { %v4285_v24 = vpop.f32.mrf.mxu1 }
 0x48f   : > { %v2944_v25 = vpop.f32.mrf.mxu1 }
 0x491   : > { %v4303_v26 = vpop.f32.mrf.mxu1  ;;  %v2704_v28 = vpop.f32.mrf.mxu0 }
 0x492   : > { %v2791_v31 = vadd.f32 %v2790_v23, %v2704_v28 }
 0x493   : > { %v4276_v29 = vpop.f32.mrf.mxu0 }
 0x495   : > { %v3098_v30 = vpop.f32.mrf.mxu1 }
 0x497   : > { %v2868_v32 = vpop.f32.mrf.mxu0  ;;  %v4321_v33 = vpop.f32.mrf.mxu1 }
 0x498   : > { %v2869_v34 = vadd.f32 %v2868_v32, %v2791_v31 }
 0x499   : > { %v4294_v35 = vpop.f32.mrf.mxu0 }
 0x49a   : > { %v2945_v36 = vadd.f32 %v2944_v25, %v2869_v34 }
 0x49d   : > { %v3024_v37 = vpop.f32.mrf.mxu0 }
 0x49e   : > { %v3025_v38 = vadd.f32 %v3024_v37, %v2945_v36 }
 0x49f   : > { %v4312_v39 = vpop.f32.mrf.mxu0 }
 0x4a0   : > { %v3099_v40 = vadd.f32 %v3098_v30, %v3025_v38 }
 0x4a2   : > { %v3102_v41 = vmul.f32 %v3099_v40, %v5412_v27 }
 0x4a4   : > { %v3104_v42 = vsel %vm3103_vm5, %v3102_v41, 0.0 }
 0x4a5   : > { %v3105_v43 = vrot.slane %v3104_v42, 4 }
 0x4a7   : > { %v3106_v44 = vadd.f32 %v3105_v43, %v3104_v42 }
 0x4a9   : > { %v3107_v45 = vrot.slane %v3106_v44, 2 }
 0x4ab   : > { %v3108_v46 = vadd.f32 %v3107_v45, %v3106_v44 }
 0x4ad   : > { %v3109_v47 = vrot.slane %v3108_v46, 1 }
 0x4af   : > { %v3110_v48 = vadd.f32 %v3109_v47, %v3108_v46 }
 0x4b1   : > { %v3117_v49 = vsel %vm455_vm1, %v3110_v48, 0 }
 0x4b2   : > { %v3188_v50 = vand.u32 4294901760, %v3117_v49 }
 0x4b4   : > { %v3189_v51 = vsub.f32 %v3117_v49, %v3188_v50  ;;  %4342 = vmatmul.mubr.f32.vlgmr.msra.gmra.mxu1 %v3188_v50 }
 0x4b5   : > { %4356 = vmatpush3.msra.mxu1 %v5575_v1  ;;  %4363 = vmatprep.mubr.msk.f32.mxu1 %vm4741_vm0, %v4740_v0 }
 0x4b6   : > { %4357 = vmatprep.subr.mxu1 %v4740_v0  ;;  %v3190_v27 = vand.u32 4294901760, %v3189_v51 }
 0x4b7   : > { %4358 = vmatpush3.msra.mxu1 %v5580_v4 }
 0x4b8   : > { %4359 = vmatprep.subr.mxu1 %v4740_v0  ;;  %v3191_v52 = vsub.f32 %v3189_v51, %v3190_v27 }
 0x4b9   : > { %4360 = vmatpush3.msra.mxu1 %v5588_v8 }
 0x4ba   : > { %4361 = vmatprep.subr.mxu1 %v4740_v0  ;;  %v3192_v54 = vand.u32 4294901760, %v3191_v52 }
 0x4bb   : > { %4362 = vmatpush3.msra.mxu1 %v5599_v13 }
 0x4bc   : > { %4364 = vmatmul.mubr.f32.vlgmr.msra.gmra.mxu1 %v3190_v27  ;;  %4377 = vmatprep.subr.mxu1 %v4740_v0 }
 0x4bd   : > { %4331 = vmatmul.mubr.f32.vlgmr.msra.gmra.mxu0 %v3192_v54  ;;  %4378 = vmatpush3.msra.mxu1 %v5575_v1 }
 0x4be   : > { %4345 = vmatpush3.msra.mxu0 %v5578_v3  ;;  %4379 = vmatprep.subr.mxu1 %v4740_v0 }
 0x4bf   : > { %4346 = vmatprep.subr.mxu0 %v4740_v0  ;;  %4380 = vmatpush3.msra.mxu1 %v5580_v4 }
 0x4c0   : > { %4347 = vmatpush3.msra.mxu0 %v5586_v63  ;;  %4381 = vmatprep.subr.mxu1 %v4740_v0 }
 0x4c1   : > { %4348 = vmatprep.subr.mxu0 %v4740_v0  ;;  %4382 = vmatpush3.msra.mxu1 %v5588_v8 }
 0x4c2   : > { %4349 = vmatpush3.msra.mxu0 %v5597_v12  ;;  %4383 = vmatprep.subr.mxu1 %v4740_v0 }
 0x4c3   : > { %4350 = vmatprep.subr.mxu0 %v4740_v0  ;;  %4352 = vmatprep.mubr.msk.f32.mxu0 %vm4741_vm0, %v4740_v0 }
 0x4c4   : > { %4351 = vmatpush3.msra.mxu0 %v5608_v16  ;;  %4384 = vmatpush3.msra.mxu1 %v5599_v13 }
 0x4c5   : > { %4385 = vmatprep.mubr.msk.f32.mxu1 %vm4741_vm0, %v4740_v0  ;;  %4353 = vmatmul.mubr.f32.vlgmr.msra.gmra.mxu0 %v3189_v51 }
 0x4c6   : > { %4366 = vmatprep.subr.mxu0 %v4740_v0  ;;  %4386 = vmatmul.mubr.f32.vlgmr.msra.gmra.mxu1 %v3188_v50 }
 0x4c7   : > { %4367 = vmatpush3.msra.mxu0 %v3225_v7  ;;  %4374 = vmatprep.mubr.msk.f32.mxu0 %vm4741_vm0, %v4740_v0 }
 0x4c8   : > { %4368 = vmatprep.subr.mxu0 %v4740_v0 }
 0x4c9   : > { %4369 = vmatpush3.msra.mxu0 %v3232_v11 }
 0x4ca   : > { %4370 = vmatprep.subr.mxu0 %v4740_v0 }
 0x4cb   : > { %4371 = vmatpush3.msra.mxu0 %v3239_v15 }
 0x4cc   : > { %4372 = vmatprep.subr.mxu0 %v4740_v0 }
 0x4cd   : > { %4373 = vmatpush3.msra.mxu0 %v3246_v19 }
 0x4ce   : > { %4375 = vmatmul.mubr.f32.vlgmr.msra.gmra.mxu0 %v3188_v50 }
 0x574   : > { %v3285_v6 = vpop.f32.mrf.mxu1 }
 0x576   : > { %v4343_v55 = vpop.f32.mrf.mxu1 }
 0x57c   : > { %v3442_v57 = vpop.f32.mrf.mxu1 }
 0x57d   : > { %v3194_v58 = vpop.f32.mrf.mxu0 }
 0x57e   : > { %v4365_v59 = vpop.f32.mrf.mxu1  ;;  %v3195_v62 = vadd.f32 %v3194_v58, %v3115_v61 }
 0x57f   : > { %v4332_v60 = vpop.f32.mrf.mxu0 }
 0x580   : > { %v3286_v0 = vadd.f32 %v3285_v6, %v3195_v62 }
 0x585   : > { %v3365_v56 = vpop.f32.mrf.mxu0 }
 0x586   : > { %v3600_v1 = vpop.f32.mrf.mxu1  ;;  %v3366_v4 = vadd.f32 %v3365_v56, %v3286_v0 }
 0x587   : > { %v4354_v2 = vpop.f32.mrf.mxu0 }
 0x588   : > { %v4387_v3 = vpop.f32.mrf.mxu1  ;;  %v3443_v5 = vadd.f32 %v3442_v57, %v3366_v4 }
 0x58e   : > { %v3525_v7 = vpop.f32.mrf.mxu0 }
 0x58f   : > { %v3526_v63 = vadd.f32 %v3525_v7, %v3443_v5 }
 0x590   : > { %v4376_v8 = vpop.f32.mrf.mxu0 }
 0x591   : > { %v3601_v9 = vadd.f32 %v3600_v1, %v3526_v63 }
 0x593   : > { %3604 = vst [vmem:[%s447_s2] sm:$0x1] %v3601_v9 }
 0x594   : > { %4667 = shalt.err (!%p4664_p3)
}
 0x595   : > { %s4668_s17 = scalar_lea.hbm %s3616_s25, 16  ;;  %s4672_s21 = scalar_lea.hbm %s5716_s10, 32 }
 0x596   : > { %p4669_p4 = scmp.ne.s32.totalorder %s3616_s25, %s4668_s17  ;;  %p4673_p2 = scmp.lt.s32.totalorder %s3616_s25, %s5716_s10 }
 0x597   : > { %p4674_p5 = scmp.lt.s32.totalorder %s4672_s21, %s4668_s17 }
 0x598   : > { %p4670_p12 = pnand %p4669_p4, %p5748_p10 }
 0x599   : > { %p4675_p8 = por %p4674_p5, %p4673_p2 }
 0x59a   : > { %p4671_p6 = pneg %p4670_p12 }
 0x59c   : > { %p4676_p11 = pnand %p4675_p8, %p4671_p6 }
 0x59e   : > { %4679 = shalt.err (!%p4676_p11)
}
 0x59f   : > { %4413 = dma.vmem_to_hbm [thread:$0]  (%p5748_p10), %s3619_s4, 16, %s3616_s25, %s3606_s1  }
 0x5a0 PF: > { %s3630_s2 = sand.u32 1, %s4718_s13   ;;  %p5749_p0 = scmp.ne.s32.totalorder %s5736_s18, 0 }
 0x5a1   : > { %p5750_p13 = scmp.ge.s32.totalorder %s4730_s16, 2  ;;  %s3631_s22 = scalar_lea.sflag [#allocation4], %s3630_s2 }
 0x5a3   : > { %p4436_p7 = pnand %p5750_p13, %p5749_p0 }
 0x5a5   : > { %p4437_p9 = pneg %p4436_p7 }
 0x5a7   : > { %4713 = dma.done.wait (%p4437_p9), %s3631_s22, 16  }
 0x5a8   : > { %4715 = vsyncadd (%p4437_p9), %s3631_s22, 4294967280  ;;  %p26_p1 = scmp.ge.s32.totalorder %s4906_s26, 4   ;;  %s5751_s13 = smov %s4722_s14 }
 0x5a9   : > { %s5752_s14 = smov %s4726_s15  ;;  %s5753_s15 = smov %s4918_s29 }
 0x5aa   : > { %s5754_s16 = smov %s4906_s26  ;;  %28 = sbr.rel (!%p26_p1) target bundleno = 13 (0xd), region = 125 }
 0x5af   :  { %3635 = vsyncpa [#allocation3], 1 }
 0x5b0   :  { %3637 = vsyncpa [#allocation3 + $0x1], 1 }
 0x5b1   :  { %3638 = vsyncpa [#allocation6], 1 }
 0x5b2   :  { %3639 = vsyncpa [#allocation9], 1 }
 0x5b3   :  { %3640 = vsyncpa [#allocation12], 1 }
 0x5b4   :  { %3641 = vsyncpa [#allocation4], 1 }
 0x5b5   :  { %3643 = vsyncpa [#allocation4 + $0x1], 1 }

</bundles_post_ra>
